<compile_context>
chip_gen: v7x
topology: tpu7x:2x2x1
jax: 0.10.0
libtpu: 0.0.40
codegen_flags: <defaults>
</compile_context>

<pallas_src>
import functools

import jax
import jax.numpy as jnp
from jax.experimental import pallas as pl
from jax.experimental.pallas import tpu as pltpu

NHIDDEN = 512
LANE = 128


def _cdiv(a, b):
    return -(-a // b)


def _round_up(n, m):
    return _cdiv(n, m) * m


def _bf16_elementwise_ok():
    """bf16 VPU/EUP path exists on v6e/v7x; keep f32 elementwise on v5e and older."""
    try:
        kind = jax.devices()[0].device_kind.lower()
    except Exception:
        return False
    return not any(t in kind for t in ("v2", "v3", "v4", "v5"))


# ----------------------------- kernels --------------------------------------


def _mlp(z, w1, b1, w2, b2, w5, b5, act_dtype):
    """f1(z): MXU dots in bf16 with f32 accumulation; bias add + tanh in act_dtype."""
    a1 = jnp.dot(z.astype(jnp.bfloat16), w1, preferred_element_type=jnp.float32)
    h1 = jnp.tanh(a1.astype(act_dtype) + b1)      # bf16 tanh on v6e/v7x, f32 on v5e
    a2 = jnp.dot(h1.astype(jnp.bfloat16), w2, preferred_element_type=jnp.float32)
    h2 = jnp.tanh(a2.astype(act_dtype) + b2)
    return jnp.dot(h2.astype(jnp.bfloat16), w5, preferred_element_type=jnp.float32) + b5


def _load_operands(x_ref, w1_ref, b1_ref, w2_ref, b2_ref, w5_ref, b5_ref, act_dtype):
    x = x_ref[...]                      # (TB, Ep) f32
    w1 = w1_ref[...]                    # (Ep, H)  bf16
    w2 = w2_ref[...]                    # (H,  H)  bf16
    w5 = w5_ref[...]                    # (H,  Ep) bf16
    tb = x.shape[0]
    h = w1.shape[1]
    ep = w5.shape[1]
    # Hoist bias broadcasts once (JAX does not CSE broadcast_in_dim across inlined stages).
    b1 = jnp.broadcast_to(b1_ref[...].astype(act_dtype), (tb, h))
    b2 = jnp.broadcast_to(b2_ref[...].astype(act_dtype), (tb, h))
    b5 = jnp.broadcast_to(b5_ref[...], (tb, ep))     # output bias stays f32
    return x, w1, b1, w2, b2, w5, b5


def _f1_kernel(x_ref, w1_ref, b1_ref, w2_ref, b2_ref, w5_ref, b5_ref, o_ref, *, act_dtype):
    """Forward of the spec module f1 for one (TB, Ep) batch tile, entirely in VMEM."""
    x, w1, b1, w2, b2, w5, b5 = _load_operands(
        x_ref, w1_ref, b1_ref, w2_ref, b2_ref, w5_ref, b5_ref, act_dtype)
    o_ref[...] = _mlp(x, w1, b1, w2, b2, w5, b5, act_dtype)


def _flow_rk4_kernel(x_ref, w1_ref, b1_ref, w2_ref, b2_ref, w5_ref, b5_ref, o_ref, *, act_dtype):
    """Single fixed RK4 step of dx/dt = f1(x) over t in [0, 1] (previous NeuralODE wrapper)."""
    x, w1, b1, w2, b2, w5, b5 = _load_operands(
        x_ref, w1_ref, b1_ref, w2_ref, b2_ref, w5_ref, b5_ref, act_dtype)
    f = lambda z: _mlp(z, w1, b1, w2, b2, w5, b5, act_dtype)
    k1 = f(x)
    acc = k1                              # incremental accumulation: fewer live temporaries
    k2 = f(x + 0.5 * k1)
    acc = acc + 2.0 * k2
    k3 = f(x + 0.5 * k2)
    acc = acc + 2.0 * k3
    k4 = f(x + k3)
    acc = acc + k4
    o_ref[...] = x + acc * (1.0 / 6.0)


# ----------------------------- params ---------------------------------------


def make_f1_params(key, encoding_size, nhidden=NHIDDEN):
    """Deterministic init mimicking nn.Linear's U(-1/sqrt(fan_in), 1/sqrt(fan_in))."""
    def linear(key, fan_in, fan_out):
        kw, kb = jax.random.split(key)
        bound = 1.0 / jnp.sqrt(jnp.float32(fan_in))
        w = jax.random.uniform(kw, (fan_in, fan_out), jnp.float32, -bound, bound)
        b = jax.random.uniform(kb, (1, fan_out), jnp.float32, -bound, bound)
        return w, b

    k1, k2, k3 = jax.random.split(key, 3)
    w1, b1 = linear(k1, encoding_size, nhidden)
    w2, b2 = linear(k2, nhidden, nhidden)
    w5, b5 = linear(k3, nhidden, encoding_size)
    return dict(w1=w1, b1=b1, w2=w2, b2=b2, w5=w5, b5=b5)


def prepare_f1_params(params):
    """One-time prep: zero-pad the encoding dim to a lane-dense 128 multiple and cast
    weights to bf16.  NOTE: padded W1 rows and padded W5/b5 columns MUST stay exactly
    zero (the padded output columns are then exactly zero and get sliced off)."""
    E, _ = params["w1"].shape
    Ep = _round_up(max(E, LANE), LANE)
    pad_e = Ep - E
    return dict(
        w1=jnp.pad(params["w1"], ((0, pad_e), (0, 0))).astype(jnp.bfloat16),
        b1=params["b1"].astype(jnp.float32),
        w2=params["w2"].astype(jnp.bfloat16),
        b2=params["b2"].astype(jnp.float32),
        w5=jnp.pad(params["w5"], ((0, 0), (0, pad_e))).astype(jnp.bfloat16),
        b5=jnp.pad(params["b5"], ((0, 0), (0, pad_e))).astype(jnp.float32),
    )


# ----------------------------- wrappers --------------------------------------


def _tile_plan(batch, target_rows=512):
    """Adaptive batch tiling: ~512-row tiles, even grid-step count when possible."""
    b8 = _round_up(max(batch, 8), 8)
    n_steps = _cdiv(b8, target_rows)
    # Prefer an even step count (balances v7x's 2 TensorCores) while each step >=128 rows.
    if n_steps % 2 == 1 and b8 // (n_steps + 1) >= 128:
        n_steps += 1
    tb = _round_up(_cdiv(b8, n_steps), 8)      # adaptive: never pad a whole wasted tile
    return tb, tb * n_steps, n_steps


def _pallas_forward(kernel_body, x, prepared, bf16_act):
    B, E = x.shape
    Ep, H = prepared["w1"].shape
    act_dtype = jnp.bfloat16 if bf16_act else jnp.float32

    x = x.astype(jnp.float32)
    if Ep != E:
        x = jnp.pad(x, ((0, 0), (0, Ep - E)))          # lane-dense state
    tb, bp, n_steps = _tile_plan(B)
    if bp != B:
        x = jnp.pad(x, ((0, bp - B), (0, 0)))

    x_map = lambda i: (i, 0)       # batch-tiled
    w_map = lambda i: (0, 0)       # VMEM-resident across grid steps

    out = pl.pallas_call(
        functools.partial(kernel_body, act_dtype=act_dtype),
        out_shape=jax.ShapeDtypeStruct((bp, Ep), jnp.float32),
        grid=(n_steps,),
        in_specs=[
            pl.BlockSpec((tb, Ep), x_map),   # x
            pl.BlockSpec((Ep, H), w_map),    # W1 (bf16)
            pl.BlockSpec((1, H), w_map),     # b1
            pl.BlockSpec((H, H), w_map),     # W2 (bf16)
            pl.BlockSpec((1, H), w_map),     # b2
            pl.BlockSpec((H, Ep), w_map),    # W5 (bf16)
            pl.BlockSpec((1, Ep), w_map),    # b5
        ],
        out_specs=pl.BlockSpec((tb, Ep), x_map),
        compiler_params=pltpu.CompilerParams(
            dimension_semantics=("parallel",),   # batch tiles shard across v7x's 2 TCs
            vmem_limit_bytes=32 << 20,
        ),
    )(
        x,
        prepared["w1"], prepared["b1"],
        prepared["w2"], prepared["b2"],
        prepared["w5"], prepared["b5"],
    )
    return out[:B, :E]


@functools.partial(jax.jit, static_argnames=("bf16_act",))
def _f1_forward_jit(x, prepared, *, bf16_act):
    return _pallas_forward(_f1_kernel, x, prepared, bf16_act)


@functools.partial(jax.jit, static_argnames=("bf16_act",))
def _flow_node_forward_jit(x, prepared, *, bf16_act):
    return _pallas_forward(_flow_rk4_kernel, x, prepared, bf16_act)


def f1_forward(x, prepared, *, bf16_act=None):
    """Forward pass of the PyTorch module `f1` (the spec)."""
    if bf16_act is None:
        bf16_act = _bf16_elementwise_ok()
    return _f1_forward_jit(x, prepared, bf16_act=bf16_act)


def flow_node_forward(x, prepared, *, bf16_act=None):
    """NeuralODE(f1, rk4, t_span=[0,1]) forward (single RK4 step), kept from the previous version."""
    if bf16_act is None:
        bf16_act = _bf16_elementwise_ok()
    return _flow_node_forward_jit(x, prepared, bf16_act=bf16_act)


# ----------------------------- references ------------------------------------


def _f1_reference(x, p, dot_dtype=jnp.float32, act_dtype=jnp.float32):
    a1 = jnp.dot(x.astype(dot_dtype), p["w1"].astype(dot_dtype), preferred_element_type=jnp.float32)
    h1 = jnp.tanh(a1.astype(act_dtype) + p["b1"].astype(act_dtype))
    a2 = jnp.dot(h1.astype(dot_dtype), p["w2"].astype(dot_dtype), preferred_element_type=jnp.float32)
    h2 = jnp.tanh(a2.astype(act_dtype) + p["b2"].astype(act_dtype))
    return jnp.dot(h2.astype(dot_dtype), p["w5"].astype(dot_dtype), preferred_element_type=jnp.float32) + p["b5"]


def _flow_reference(x, p, dot_dtype=jnp.float32, act_dtype=jnp.float32):
    f = lambda z: _f1_reference(z, p, dot_dtype, act_dtype)
    k1 = f(x)
    k2 = f(x + 0.5 * k1)
    k3 = f(x + 0.5 * k2)
    k4 = f(x + k3)
    return x + (k1 + 2.0 * k2 + 2.0 * k3 + k4) / 6.0


if __name__ == "__main__":
    encoding_size = 16
    batch = 300   # not a multiple of the tile -> exercises padding, adaptive TB, 2-step grid

    key = jax.random.PRNGKey(0)
    kx, kp = jax.random.split(key)
    x = jax.random.normal(kx, (batch, encoding_size), jnp.float32)
    params = make_f1_params(kp, encoding_size)
    prepared = prepare_f1_params(params)

    bf16_act = _bf16_elementwise_ok()
    act_dtype = jnp.bfloat16 if bf16_act else jnp.float32

    # --- f1 forward (the spec module) ---
    out = jax.block_until_ready(f1_forward(x, prepared, bf16_act=bf16_act))
    assert out.shape == (batch, encoding_size)
    ref_matched = _f1_reference(x, params, dot_dtype=jnp.bfloat16, act_dtype=act_dtype)
    ref_f32 = _f1_reference(x, params)
    assert jnp.allclose(out, ref_matched, atol=2e-2, rtol=2e-2)
    assert jnp.allclose(out, ref_f32, atol=5e-2, rtol=5e-2)

    # --- NeuralODE single-RK4-step wrapper (previous version's target), reuses same MLP ---
    flow = jax.block_until_ready(flow_node_forward(x, prepared, bf16_act=bf16_act))
    assert flow.shape == (batch, encoding_size)
    flow_matched = _flow_reference(x, params, dot_dtype=jnp.bfloat16, act_dtype=act_dtype)
    flow_f32 = _flow_reference(x, params)
    assert jnp.allclose(flow, flow_matched, atol=5e-2, rtol=5e-2)
    assert jnp.allclose(flow, flow_f32, atol=1e-1, rtol=1e-1)

    print("KERNEL_OK")
</pallas_src>

<mosaic_0001>
module attributes {stable_mosaic.version = 11 : i64} {
  func.func @_f1_kernel(%arg0: i32, %arg1: memref<152x128xf32, #tpu.memory_space<vmem>>, %arg2: memref<128x512xbf16, #tpu.memory_space<vmem>>, %arg3: memref<1x512xf32, #tpu.memory_space<vmem>>, %arg4: memref<512x512xbf16, #tpu.memory_space<vmem>>, %arg5: memref<1x512xf32, #tpu.memory_space<vmem>>, %arg6: memref<512x128xbf16, #tpu.memory_space<vmem>>, %arg7: memref<1x128xf32, #tpu.memory_space<vmem>>, %arg8: memref<152x128xf32, #tpu.memory_space<vmem>>) attributes {dimension_semantics = [#tpu.dimension_semantics<parallel>], iteration_bounds = array<i64: 2>, scalar_prefetch = 0 : i64, scratch_operands = 0 : i64, tpu.core_type = #tpu.core_type<tc>, window_params = [{transform_indices = @transform_0, window_bounds = array<i64: 152, 128>}, {pipeline_mode = #tpu.pipeline_mode<synchronous>, transform_indices = @transform_1, window_bounds = array<i64: 128, 512>}, {pipeline_mode = #tpu.pipeline_mode<synchronous>, transform_indices = @transform_2, window_bounds = array<i64: 1, 512>}, {pipeline_mode = #tpu.pipeline_mode<synchronous>, transform_indices = @transform_3, window_bounds = array<i64: 512, 512>}, {pipeline_mode = #tpu.pipeline_mode<synchronous>, transform_indices = @transform_4, window_bounds = array<i64: 1, 512>}, {pipeline_mode = #tpu.pipeline_mode<synchronous>, transform_indices = @transform_5, window_bounds = array<i64: 512, 128>}, {pipeline_mode = #tpu.pipeline_mode<synchronous>, transform_indices = @transform_6, window_bounds = array<i64: 1, 128>}, {transform_indices = @transform_7, window_bounds = array<i64: 152, 128>}]} {
    %c0 = arith.constant 0 : index
    %c0_0 = arith.constant 0 : index
    %0 = vector.load %arg1[%c0, %c0_0] : memref<152x128xf32, #tpu.memory_space<vmem>>, vector<152x128xf32>
    %c0_1 = arith.constant 0 : index
    %c0_2 = arith.constant 0 : index
    %1 = vector.load %arg2[%c0_1, %c0_2] : memref<128x512xbf16, #tpu.memory_space<vmem>>, vector<128x512xbf16>
    %c0_3 = arith.constant 0 : index
    %c0_4 = arith.constant 0 : index
    %2 = vector.load %arg4[%c0_3, %c0_4] : memref<512x512xbf16, #tpu.memory_space<vmem>>, vector<512x512xbf16>
    %c0_5 = arith.constant 0 : index
    %c0_6 = arith.constant 0 : index
    %3 = vector.load %arg6[%c0_5, %c0_6] : memref<512x128xbf16, #tpu.memory_space<vmem>>, vector<512x128xbf16>
    %c0_7 = arith.constant 0 : index
    %c0_8 = arith.constant 0 : index
    %4 = vector.load %arg3[%c0_7, %c0_8] : memref<1x512xf32, #tpu.memory_space<vmem>>, vector<1x512xf32>
    %5 = arith.truncf %4 : vector<1x512xf32> to vector<1x512xbf16>
    %6 = vector.shape_cast %5 : vector<1x512xbf16> to vector<1x512xbf16>
    %7 = vector.broadcast %6 : vector<1x512xbf16> to vector<152x512xbf16>
    %c0_9 = arith.constant 0 : index
    %c0_10 = arith.constant 0 : index
    %8 = vector.load %arg5[%c0_9, %c0_10] : memref<1x512xf32, #tpu.memory_space<vmem>>, vector<1x512xf32>
    %9 = arith.truncf %8 : vector<1x512xf32> to vector<1x512xbf16>
    %10 = vector.shape_cast %9 : vector<1x512xbf16> to vector<1x512xbf16>
    %11 = vector.broadcast %10 : vector<1x512xbf16> to vector<152x512xbf16>
    %c0_11 = arith.constant 0 : index
    %c0_12 = arith.constant 0 : index
    %12 = vector.load %arg7[%c0_11, %c0_12] : memref<1x128xf32, #tpu.memory_space<vmem>>, vector<1x128xf32>
    %13 = vector.shape_cast %12 : vector<1x128xf32> to vector<1x128xf32>
    %14 = vector.broadcast %13 : vector<1x128xf32> to vector<152x128xf32>
    %15 = arith.truncf %0 : vector<152x128xf32> to vector<152x128xbf16>
    %cst = arith.constant dense<0.000000e+00> : vector<152x512xf32>
    %16 = tpu.matmul %15, %1, %cst {dimension_numbers = #tpu.dot_dimension_numbers<[1], [0], [0], [1], [0, 0, 1, 1], [], []>} : vector<152x128xbf16>, vector<128x512xbf16>, vector<152x512xf32> -> vector<152x512xf32>
    %17 = arith.truncf %16 : vector<152x512xf32> to vector<152x512xbf16>
    %18 = arith.addf %17, %7 : vector<152x512xbf16>
    %19 = math.tanh %18 : vector<152x512xbf16>
    %cst_13 = arith.constant dense<0.000000e+00> : vector<152x512xf32>
    %20 = tpu.matmul %19, %2, %cst_13 {dimension_numbers = #tpu.dot_dimension_numbers<[1], [0], [0], [1], [0, 0, 1, 1], [], []>} : vector<152x512xbf16>, vector<512x512xbf16>, vector<152x512xf32> -> vector<152x512xf32>
    %21 = arith.truncf %20 : vector<152x512xf32> to vector<152x512xbf16>
    %22 = arith.addf %21, %11 : vector<152x512xbf16>
    %23 = math.tanh %22 : vector<152x512xbf16>
    %cst_14 = arith.constant dense<0.000000e+00> : vector<152x128xf32>
    %24 = tpu.matmul %23, %3, %cst_14 {dimension_numbers = #tpu.dot_dimension_numbers<[1], [0], [0], [1], [0, 0, 1, 1], [], []>} : vector<152x512xbf16>, vector<512x128xbf16>, vector<152x128xf32> -> vector<152x128xf32>
    %25 = arith.addf %24, %14 : vector<152x128xf32>
    %c0_15 = arith.constant 0 : index
    %c0_16 = arith.constant 0 : index
    %26 = vector.load %arg8[%c0_15, %c0_16] : memref<152x128xf32, #tpu.memory_space<vmem>>, vector<152x128xf32>
    tpu.vector_store %arg8[%c0_15, %c0_16], %25 {strides = array<i32>} : memref<152x128xf32, #tpu.memory_space<vmem>>, vector<152x128xf32>,
    return
  }
  func.func @transform_0(%arg0: i32) -> (i32, i32) {
    %c0_i32 = arith.constant 0 : i32
    %c0_i32_0 = arith.constant 0 : i32
    return %arg0, %c0_i32 : i32, i32
  }
  func.func @transform_1(%arg0: i32) -> (i32, i32) {
    %c0_i32 = arith.constant 0 : i32
    %c0_i32_0 = arith.constant 0 : i32
    %c0_i32_1 = arith.constant 0 : i32
    return %c0_i32, %c0_i32_0 : i32, i32
  }
  func.func @transform_2(%arg0: i32) -> (i32, i32) {
    %c0_i32 = arith.constant 0 : i32
    %c0_i32_0 = arith.constant 0 : i32
    %c0_i32_1 = arith.constant 0 : i32
    return %c0_i32, %c0_i32_0 : i32, i32
  }
  func.func @transform_3(%arg0: i32) -> (i32, i32) {
    %c0_i32 = arith.constant 0 : i32
    %c0_i32_0 = arith.constant 0 : i32
    %c0_i32_1 = arith.constant 0 : i32
    return %c0_i32, %c0_i32_0 : i32, i32
  }
  func.func @transform_4(%arg0: i32) -> (i32, i32) {
    %c0_i32 = arith.constant 0 : i32
    %c0_i32_0 = arith.constant 0 : i32
    %c0_i32_1 = arith.constant 0 : i32
    return %c0_i32, %c0_i32_0 : i32, i32
  }
  func.func @transform_5(%arg0: i32) -> (i32, i32) {
    %c0_i32 = arith.constant 0 : i32
    %c0_i32_0 = arith.constant 0 : i32
    %c0_i32_1 = arith.constant 0 : i32
    return %c0_i32, %c0_i32_0 : i32, i32
  }
  func.func @transform_6(%arg0: i32) -> (i32, i32) {
    %c0_i32 = arith.constant 0 : i32
    %c0_i32_0 = arith.constant 0 : i32
    %c0_i32_1 = arith.constant 0 : i32
    return %c0_i32, %c0_i32_0 : i32, i32
  }
  func.func @transform_7(%arg0: i32) -> (i32, i32) {
    %c0_i32 = arith.constant 0 : i32
    %c0_i32_0 = arith.constant 0 : i32
    return %arg0, %c0_i32 : i32, i32
  }
}

</mosaic_0001>

<bundles_post_ra>
// kernel: _f1_forward_jit.1
= control target key start
LH: loop header
LB: loop body
LE: loop exit
PB: predicated region body
PF: predicated region fallthrough
CT: control target
= control target key end

     0   :  { %12 = vsyncpa [#allocation3], 0  ;;  %s3969_s24 = smov 0   ;;  %s4621_s0 = inlined_call_operand.vmem [shape: f32[304,128], index: 0, kind: input, shape index: {}]   ;;  %s4622_s1 = inlined_call_operand.vmem [shape: bf16[128,512], index: 1, kind: input, shape index: {}]   ;;  %s4623_s2 = inlined_call_operand.vmem [shape: f32[1,512], index: 2, kind: input, shape index: {}]   ;;  %s4624_s3 = inlined_call_operand.hbm [shape: bf16[512,512], index: 3, kind: input, shape index: {}]   ;;  %s4625_s4 = inlined_call_operand.vmem [shape: f32[1,512], index: 4, kind: input, shape index: {}]   ;;  %s4626_s5 = inlined_call_operand.vmem [shape: bf16[512,128], index: 5, kind: input, shape index: {}]   ;;  %s4627_s6 = inlined_call_operand.vmem [shape: f32[1,128], index: 6, kind: input, shape index: {}]   ;;  %s4628_s7 = inlined_call_operand.vmem [shape: f32[304,128], index: 7, kind: output, shape index: {}]  }
   0x1 LB: > { %s2995_s25 = sadd.s32 4294967295, %s3923_s24   ;;  %p2997_p0 = scmp.ge.s32.totalorder %s3923_s24, 1  ;;  %s3923_s24 = sphi %s3969_s24, %s18_s24  }
   0x2   : > { %p201_p1 = scmp.lt.s32.totalorder %s3923_s24, 3  ;;  %s3925_s26 = smov [#allocation2]  }
   0x3   : > { %s219_s27 = sshll.u32 %s3925_s26, 4  ;;  %p3983_p3 = scmp.eq.s32.totalorder %s2995_s25, 0  ;;  %s220_s27 = int_to_ptr.vmem [resolvable:$true] %s219_s27 }
   0x4   : > { %p3977_p2 = pnand %p2997_p0, %p201_p1  ;;  %s3885_s10 = scalar_lea.hbm %s4624_s3, 16384 }
   0x5   : > { %s4636_s29 = scalar_select %p3983_p3, 1, 0 }
   0x6   : > { %s4635_s28 = scalar_select %p3977_p2, 1, 0 }
   0x7   : > { %p3435_p4 = pneg %p3977_p2  ;;  %p3886_p6 = scmp.ne.s32.totalorder %s4624_s3, %s3885_s10 }
   0x8   : > { %p3892_p10 = scmp.lt.u32.totalorder %s3885_s10, %s4624_s3 }
   0x9   : > { %p3991_p5 = pnand %p3983_p3, %p3435_p4 }
   0xb   : > { %p3887_p7 = pneg %p3991_p5 }
   0xd   : > { %p3888_p8 = pnand %p3887_p7, %p3886_p6 }
   0xf   : > { %p3889_p9 = pneg %p3888_p8 }
  0x11   : > { %p3894_p11 = pnand %p3892_p10, %p3889_p9 }
  0x13   : > { %3897 = shalt.err (!%p3894_p11)
}
  0x14   : > { %s3898_s15 = scalar_lea.vmem %s220_s27, 16384  ;;  %p3906_p1 = scmp.lt.s32.totalorder %s220_s27, %s220_s27 }
  0x15   : > { %p3899_p12 = scmp.ne.s32.totalorder %s220_s27, %s3898_s15  ;;  %p3907_p4 = scmp.lt.s32.totalorder %s3898_s15, %s3898_s15 }
  0x17   : > { %p3901_p13 = pnand %p3899_p12, %p3887_p7  ;;  %p3908_p3 = por %p3907_p4, %p3906_p1 }
  0x19   : > { %p3902_p0 = pneg %p3901_p13 }
  0x1b   : > { %p3909_p2 = pnand %p3908_p3, %p3902_p0 }
  0x1d   : > { %3912 = shalt.err (!%p3909_p2)
}
  0x1e   : > { %s3926_s16 = smov 256   ;;  %s3927_s17 = smov 16  }
  0x1f   : > { %3438 = dma.hbm_to_vmem [thread:$0]  (!%p3991_p5), %s4624_s3, 16384, %s220_s27, [#allocation3], %s3926_s16, %s3926_s16, %s3927_s17  }
  0x20   : > { %p4638_p6 = scmp.ne.s32.totalorder %s4635_s28, 0 }
  0x21   : > { %p4639_p8 = scmp.ne.s32.totalorder (!%p4638_p6), %s4636_s29, 0 }
  0x22   : > { %253 = sbr.rel (%p4638_p6) target bundleno = 913 (0x391), region = 48 }
  0x29   : > { %3918 = dma.done.wait (%p4639_p8), [#allocation3], 16384  }
  0x2a   : > { %3920 = vsyncadd (%p4639_p8), [#allocation3], 4294950912  ;;  %v3928_v0 = vmov 0   ;;  %v3453_v1 = vld [vmem:[%s4622_s1 + $0x4] ss:$16 sps:$4 sm:$0xff]   ;;  %s285_s11 = smul.u32 19, %s2995_s25 }
  0x2b   : > { %858 = vmatprep.mubr.bf16.mxu0 %v3928_v0  ;;  %989 = vmatprep.mubr.bf16.mxu1 %v3928_v0  ;;  %v3455_v2 = vld [vmem:[%s4622_s1] ss:$16 sps:$4 sm:$0xff]   ;;  %v3456_v3 = vld [vmem:[%s4622_s1 + $0x24] ss:$16 sps:$4 sm:$0xff]   ;;  %v3477_v11 = vld [vmem:[%s4622_s1 + $0xc] ss:$16 sps:$4 sm:$0xff]  }
  0x2c   : > { %826 = vmatprep.subr.bf16.mxu0 %v3453_v1  ;;  %v3458_v4 = vld [vmem:[%s4622_s1 + $0x20] ss:$16 sps:$4 sm:$0xff]   ;;  %v3459_v5 = vld [vmem:[%s4622_s1 + $0x44] ss:$16 sps:$4 sm:$0xff]   ;;  %p286_p2 = scmp.lt.s32.totalorder %s285_s11, 37  ;;  %957 = vmatprep.subr.bf16.mxu1 %v3477_v11 }
  0x2d   : > { %827 = vmatpush1.bf16.msra.mxu0 %v3455_v2  ;;  %v3461_v6 = vld [vmem:[%s4622_s1 + $0x40] ss:$16 sps:$4 sm:$0xff]   ;;  %v3462_v7 = vld [vmem:[%s4622_s1 + $0x64] ss:$16 sps:$4 sm:$0xff]   ;;  %v3479_v12 = vld [vmem:[%s4622_s1 + $0x8] ss:$16 sps:$4 sm:$0xff]  }
  0x2e   : > { %828 = vmatprep.subr.bf16.mxu0 %v3456_v3  ;;  %v3464_v8 = vld [vmem:[%s4622_s1 + $0x60] ss:$16 sps:$4 sm:$0xff]   ;;  %v3465_v9 = vld [vmem:[%s4622_s1 + $0x84] ss:$16 sps:$4 sm:$0xff]   ;;  %s4648_s11 = smov (!%p286_p2, %s285_s11), 37  ;;  %958 = vmatpush1.bf16.msra.mxu1 %v3479_v12 }
  0x2f   : > { %v3467_v10 = vld [vmem:[%s4622_s1 + $0x80] ss:$16 sps:$4 sm:$0xff]   ;;  %v3468_v13 = vld [vmem:[%s4622_s1 + $0xa4] ss:$16 sps:$4 sm:$0xff]   ;;  %v3480_v14 = vld [vmem:[%s4622_s1 + $0x2c] ss:$16 sps:$4 sm:$0xff]  }
  0x30   : > { %v3482_v15 = vld [vmem:[%s4622_s1 + $0x28] ss:$16 sps:$4 sm:$0xff]   ;;  %v3470_v16 = vld [vmem:[%s4622_s1 + $0xa0] ss:$16 sps:$4 sm:$0xff]   ;;  %s3002_s10 = sshll.u32 %s4648_s11, 3  ;;  %959 = vmatprep.subr.bf16.mxu1 %v3480_v14 }
  0x31   : > { %829 = vmatpush1.bf16.msra.mxu0 %v3458_v4  ;;  %v3483_v17 = vld [vmem:[%s4622_s1 + $0x4c] ss:$16 sps:$4 sm:$0xff]   ;;  %v3471_v18 = vld [vmem:[%s4622_s1 + $0xc4] ss:$16 sps:$4 sm:$0xff]   ;;  %v3473_v19 = vld [vmem:[%s4622_s1 + $0xc0] ss:$16 sps:$4 sm:$0xff]   ;;  %s4086_s25 = scalar_lea.vmem %s4621_s0, %s3002_s10  ;;  %s4579_s19 = scalar_lea.vmem %s4628_s7, %s3002_s10 }
  0x32   : > { %830 = vmatprep.subr.bf16.mxu0 %v3459_v5  ;;  %960 = vmatpush1.bf16.msra.mxu1 %v3482_v15  ;;  %v3485_v20 = vld [vmem:[%s4622_s1 + $0x48] ss:$16 sps:$4 sm:$0xff]   ;;  %v3486_v21 = vld [vmem:[%s4622_s1 + $0x6c] ss:$16 sps:$4 sm:$0xff]   ;;  %v3474_v22 = vld [vmem:[%s4622_s1 + $0xe4] ss:$16 sps:$4 sm:$0xff]  }
  0x33   : > { %961 = vmatprep.subr.bf16.mxu1 %v3483_v17  ;;  %v3476_v23 = vld [vmem:[%s4622_s1 + $0xe0] ss:$16 sps:$4 sm:$0xff]   ;;  %v3488_v25 = vld [vmem:[%s4622_s1 + $0x68] ss:$16 sps:$4 sm:$0xff]   ;;  %v3489_v27 = vld [vmem:[%s4622_s1 + $0x8c] ss:$16 sps:$4 sm:$0xff]  }
  0x34   : > { %v298_v24 = vld [vmem:[%s4086_s25] sm:$0xff]  ;;  %v299_v26 = vld [vmem:[%s4086_s25 + $0x8] sm:$0xff]  ;;  %v300_v33 = vld [vmem:[%s4086_s25 + $0x10] sm:$0xff] }
  0x35   : > { %831 = vmatpush1.bf16.msra.mxu0 %v3461_v6  ;;  %v3503_v28 = vld [vmem:[#allocation2 + $0x4] ss:$16 sps:$4 sm:$0xff]   ;;  %v656_v29 = vpack.c.bf16 %v299_v26, %v298_v24  ;;  %v3491_v30 = vld [vmem:[%s4622_s1 + $0x88] ss:$16 sps:$4 sm:$0xff]   ;;  %v3492_v31 = vld [vmem:[%s4622_s1 + $0xac] ss:$16 sps:$4 sm:$0xff]  }
  0x36   : > { %832 = vmatprep.subr.bf16.mxu0 %v3462_v7  ;;  %962 = vmatpush1.bf16.msra.mxu1 %v3485_v20  ;;  %v3501_v32 = vld [vmem:[#allocation2] ss:$16 sps:$4 sm:$0xff]   ;;  %v3509_v34 = vld [vmem:[#allocation2 + $0x24] ss:$16 sps:$4 sm:$0xff]   ;;  %v3494_v35 = vld [vmem:[%s4622_s1 + $0xa8] ss:$16 sps:$4 sm:$0xff]  }
  0x37   : > { %963 = vmatprep.subr.bf16.mxu1 %v3486_v21  ;;  %v301_v36 = vld [vmem:[%s4086_s25 + $0x18] sm:$0xff]  ;;  %v3507_v38 = vld [vmem:[#allocation2 + $0x20] ss:$16 sps:$4 sm:$0xff]   ;;  %v3515_v39 = vld [vmem:[#allocation2 + $0x44] ss:$16 sps:$4 sm:$0xff]  }
  0x38   : > { %v3495_v37 = vld [vmem:[%s4622_s1 + $0xcc] ss:$16 sps:$4 sm:$0xff]   ;;  %v657_v40 = vpack.c.bf16 %v301_v36, %v300_v33  ;;  %v3497_v41 = vld [vmem:[%s4622_s1 + $0xc8] ss:$16 sps:$4 sm:$0xff]   ;;  %v3513_v43 = vld [vmem:[#allocation2 + $0x40] ss:$16 sps:$4 sm:$0xff]  }
  0x39   : > { %833 = vmatpush1.bf16.msra.mxu0 %v3464_v8  ;;  %v3498_v42 = vld [vmem:[%s4622_s1 + $0xec] ss:$16 sps:$4 sm:$0xff]   ;;  %v302_v44 = vld [vmem:[%s4086_s25 + $0x20] sm:$0xff]  ;;  %v3500_v46 = vld [vmem:[%s4622_s1 + $0xe8] ss:$16 sps:$4 sm:$0xff]  }
  0x3a   : > { %834 = vmatprep.subr.bf16.mxu0 %v3465_v9  ;;  %964 = vmatpush1.bf16.msra.mxu1 %v3488_v25  ;;  %v3521_v45 = vld [vmem:[#allocation2 + $0x64] ss:$16 sps:$4 sm:$0xff]   ;;  %v303_v47 = vld [vmem:[%s4086_s25 + $0x28] sm:$0xff]  ;;  %v3519_v49 = vld [vmem:[#allocation2 + $0x60] ss:$16 sps:$4 sm:$0xff]  }
  0x3b   : > { %965 = vmatprep.subr.bf16.mxu1 %v3489_v27  ;;  %v3506_v48 = vld [vmem:[#allocation2 + $0xc] ss:$16 sps:$4 sm:$0xff]   ;;  %v3527_v50 = vld [vmem:[#allocation2 + $0x84] ss:$16 sps:$4 sm:$0xff]   ;;  %v658_v51 = vpack.c.bf16 %v303_v47, %v302_v44  ;;  %v3504_v52 = vld [vmem:[#allocation2 + $0x8] ss:$16 sps:$4 sm:$0xff]  }
  0x3c   : > { %v3512_v53 = vld [vmem:[#allocation2 + $0x2c] ss:$16 sps:$4 sm:$0xff]   ;;  %v3525_v54 = vld [vmem:[#allocation2 + $0x80] ss:$16 sps:$4 sm:$0xff]   ;;  %v3533_v55 = vld [vmem:[#allocation2 + $0xa4] ss:$16 sps:$4 sm:$0xff]  }
  0x3d   : > { %835 = vmatpush1.bf16.msra.mxu0 %v3467_v10  ;;  %v304_v56 = vld [vmem:[%s4086_s25 + $0x30] sm:$0xff]  ;;  %v305_v57 = vld [vmem:[%s4086_s25 + $0x38] sm:$0xff]  ;;  %v306_v3 = vld [vmem:[%s4086_s25 + $0x40] sm:$0xff] }
  0x3e   : > { %836 = vmatprep.subr.bf16.mxu0 %v3468_v13  ;;  %966 = vmatpush1.bf16.msra.mxu1 %v3491_v30  ;;  %v3510_v58 = vld [vmem:[#allocation2 + $0x28] ss:$16 sps:$4 sm:$0xff]   ;;  %v3518_v59 = vld [vmem:[#allocation2 + $0x4c] ss:$16 sps:$4 sm:$0xff]   ;;  %v3531_v60 = vld [vmem:[#allocation2 + $0xa0] ss:$16 sps:$4 sm:$0xff]   ;;  %v659_v62 = vpack.c.bf16 %v305_v57, %v304_v56 }
  0x3f   : > { %967 = vmatprep.subr.bf16.mxu1 %v3492_v31  ;;  %v3539_v61 = vld [vmem:[#allocation2 + $0xc4] ss:$16 sps:$4 sm:$0xff]   ;;  %v3516_v63 = vld [vmem:[#allocation2 + $0x48] ss:$16 sps:$4 sm:$0xff]   ;;  %v3524_v1 = vld [vmem:[#allocation2 + $0x6c] ss:$16 sps:$4 sm:$0xff]  }
  0x40   : > { %v3537_v2 = vld [vmem:[#allocation2 + $0xc0] ss:$16 sps:$4 sm:$0xff]   ;;  %v307_v4 = vld [vmem:[%s4086_s25 + $0x48] sm:$0xff]  ;;  %v3545_v6 = vld [vmem:[#allocation2 + $0xe4] ss:$16 sps:$4 sm:$0xff]  }
  0x41   : > { %837 = vmatpush1.bf16.msra.mxu0 %v3470_v16  ;;  %v3522_v5 = vld [vmem:[#allocation2 + $0x68] ss:$16 sps:$4 sm:$0xff]   ;;  %v3530_v7 = vld [vmem:[#allocation2 + $0x8c] ss:$16 sps:$4 sm:$0xff]   ;;  %v3543_v8 = vld [vmem:[#allocation2 + $0xe0] ss:$16 sps:$4 sm:$0xff]   ;;  %v660_v11 = vpack.c.bf16 %v307_v4, %v306_v3 }
  0x42   : > { %838 = vmatprep.subr.bf16.mxu0 %v3471_v18  ;;  %968 = vmatpush1.bf16.msra.mxu1 %v3494_v35  ;;  %v3551_v9 = vld [vmem:[#allocation2 + $0x104] ss:$16 sps:$4 sm:$0xff]   ;;  %v3528_v10 = vld [vmem:[#allocation2 + $0x88] ss:$16 sps:$4 sm:$0xff]   ;;  %v3536_v12 = vld [vmem:[#allocation2 + $0xac] ss:$16 sps:$4 sm:$0xff]  }
  0x43   : > { %969 = vmatprep.subr.bf16.mxu1 %v3495_v37  ;;  %v3549_v13 = vld [vmem:[#allocation2 + $0x100] ss:$16 sps:$4 sm:$0xff]   ;;  %v3557_v14 = vld [vmem:[#allocation2 + $0x124] ss:$16 sps:$4 sm:$0xff]   ;;  %v309_v16 = vld [vmem:[%s4086_s25 + $0x58] sm:$0xff] }
  0x44   : > { %v308_v15 = vld [vmem:[%s4086_s25 + $0x50] sm:$0xff]  ;;  %v3534_v17 = vld [vmem:[#allocation2 + $0xa8] ss:$16 sps:$4 sm:$0xff]   ;;  %v3542_v18 = vld [vmem:[#allocation2 + $0xcc] ss:$16 sps:$4 sm:$0xff]  }
  0x45   : > { %839 = vmatpush1.bf16.msra.mxu0 %v3473_v19  ;;  %v3555_v19 = vld [vmem:[#allocation2 + $0x120] ss:$16 sps:$4 sm:$0xff]   ;;  %v3563_v20 = vld [vmem:[#allocation2 + $0x144] ss:$16 sps:$4 sm:$0xff]   ;;  %v3540_v21 = vld [vmem:[#allocation2 + $0xc8] ss:$16 sps:$4 sm:$0xff]  }
  0x46   : > { %840 = vmatprep.subr.bf16.mxu0 %v3474_v22  ;;  %970 = vmatpush1.bf16.msra.mxu1 %v3497_v41  ;;  %v661_v22 = vpack.c.bf16 %v309_v16, %v308_v15  ;;  %v3561_v24 = vld [vmem:[#allocation2 + $0x140] ss:$16 sps:$4 sm:$0xff]   ;;  %v3569_v25 = vld [vmem:[#allocation2 + $0x164] ss:$16 sps:$4 sm:$0xff]   ;;  %v311_v27 = vld [vmem:[%s4086_s25 + $0x68] sm:$0xff] }
  0x47   : > { %971 = vmatprep.subr.bf16.mxu1 %v3498_v42  ;;  %v310_v26 = vld [vmem:[%s4086_s25 + $0x60] sm:$0xff]  ;;  %v3552_v31 = vld [vmem:[#allocation2 + $0x108] ss:$16 sps:$4 sm:$0xff]   ;;  %v3560_v33 = vld [vmem:[#allocation2 + $0x12c] ss:$16 sps:$4 sm:$0xff]  }
  0x48   : > { %v3567_v30 = vld [vmem:[#allocation2 + $0x160] ss:$16 sps:$4 sm:$0xff]   ;;  %v313_v35 = vld [vmem:[%s4086_s25 + $0x78] sm:$0xff]  ;;  %v315_v42 = vld [vmem:[%s4086_s25 + $0x88] sm:$0xff] }
  0x49   : > { %841 = vmatpush1.bf16.msra.mxu0 %v3476_v23  ;;  %v3548_v23 = vld [vmem:[#allocation2 + $0xec] ss:$16 sps:$4 sm:$0xff]   ;;  %v3558_v36 = vld [vmem:[#allocation2 + $0x128] ss:$16 sps:$4 sm:$0xff]   ;;  %v314_v41 = vld [vmem:[%s4086_s25 + $0x80] sm:$0xff] }
  0x4a   : > { %1848 = vmatprep.subr.bf16.mxu0 %v3503_v28  ;;  %972 = vmatpush1.bf16.msra.mxu1 %v3500_v46  ;;  %v3546_v28 = vld [vmem:[#allocation2 + $0xe8] ss:$16 sps:$4 sm:$0xff]   ;;  %v3566_v37 = vld [vmem:[#allocation2 + $0x14c] ss:$16 sps:$4 sm:$0xff]   ;;  %v664_v44 = vpack.c.bf16 %v315_v42, %v314_v41  ;;  %v3573_v47 = vld [vmem:[#allocation2 + $0x180] ss:$16 sps:$4 sm:$0xff]  }
  0x4b   : > { %2110 = vmatprep.subr.bf16.mxu1 %v3506_v48  ;;  %v3575_v48 = vld [vmem:[#allocation2 + $0x184] ss:$16 sps:$4 sm:$0xff]   ;;  %v3590_v56 = vld [vmem:[#allocation2 + $0x1cc] ss:$16 sps:$4 sm:$0xff]   ;;  %v3588_v57 = vld [vmem:[#allocation2 + $0x1c8] ss:$16 sps:$4 sm:$0xff]  }
  0x4c   : > { %859 = vmatmul.mubr.bf16.vlgmr.msra.gmra.mrb[0].mxu0 %v656_v29  ;;  %v4172_v4 = vld [vmem:[%s4623_s2] sm:$0xf] }
  0x4d   : > { %868 = vmatprep.mubr.bf16.mxu0 %v3928_v0  ;;  %1849 = vmatpush1.bf16.msra.mxu0 %v3501_v32  ;;  %v662_v32 = vpack.c.bf16 %v311_v27, %v310_v26 }
  0x4e   : > { %1850 = vmatprep.subr.bf16.mxu0 %v3509_v34  ;;  %990 = vmatmul.mubr.bf16.vlgmr.msra.gmra.mrb[0].mxu1 %v656_v29  ;;  %v3554_v29 = vld [vmem:[#allocation2 + $0x10c] ss:$16 sps:$4 sm:$0xff]   ;;  %v312_v34 = vld [vmem:[%s4086_s25 + $0x70] sm:$0xff] }
  0x4f   : > { %999 = vmatprep.mubr.bf16.mxu1 %v3928_v0  ;;  %2111 = vmatpush1.bf16.msra.mxu1 %v3504_v52  ;;  %v3584_v52 = vld [vmem:[#allocation2 + $0x1ac] ss:$16 sps:$4 sm:$0xff]  }
  0x50   : > { %2112 = vmatprep.subr.bf16.mxu1 %v3512_v53  ;;  %v3579_v53 = vld [vmem:[#allocation2 + $0x1a0] ss:$16 sps:$4 sm:$0xff]  }
  0x51   : > { %1851 = vmatpush1.bf16.msra.mxu0 %v3507_v38  ;;  %v3564_v38 = vld [vmem:[#allocation2 + $0x148] ss:$16 sps:$4 sm:$0xff]  }
  0x52   : > { %1852 = vmatprep.subr.bf16.mxu0 %v3515_v39  ;;  %v663_v39 = vpack.c.bf16 %v313_v35, %v312_v34 }
  0x53   : > { %2113 = vmatpush1.bf16.msra.mxu1 %v3510_v58  ;;  %v3593_v58 = vld [vmem:[#allocation2 + $0x1e4] ss:$16 sps:$4 sm:$0xff]  }
  0x54   : > { %869 = vmatmul.mubr.bf16.gmra.mrb[4].mxu0 %v657_v40  ;;  %2114 = vmatprep.subr.bf16.mxu1 %v3518_v59  ;;  %v3596_v59 = vld [vmem:[#allocation2 + $0x1ec] ss:$16 sps:$4 sm:$0xff]  }
  0x55   : > { %878 = vmatprep.mubr.bf16.mxu0 %v3928_v0  ;;  %1853 = vmatpush1.bf16.msra.mxu0 %v3513_v43  ;;  %v3570_v43 = vld [vmem:[#allocation2 + $0x168] ss:$16 sps:$4 sm:$0xff]  }
  0x56   : > { %1854 = vmatprep.subr.bf16.mxu0 %v3521_v45  ;;  %1000 = vmatmul.mubr.bf16.gmra.mrb[4].mxu1 %v657_v40  ;;  %v3572_v40 = vld [vmem:[#allocation2 + $0x16c] ss:$16 sps:$4 sm:$0xff]   ;;  %v316_v45 = vld [vmem:[%s4086_s25 + $0x90] sm:$0xff] }
  0x57   : > { %1009 = vmatprep.mubr.bf16.mxu1 %v3928_v0  ;;  %2115 = vmatpush1.bf16.msra.mxu1 %v3516_v63  ;;  %v665_v46 = vpack.c.bf16 %v316_v45, %v316_v45  ;;  %v3602_v63 = vld [vmem:[#allocation2 + $0x20c] ss:$16 sps:$4 sm:$0xff]  }
  0x58   : > { %2116 = vmatprep.subr.bf16.mxu1 %v3524_v1  ;;  %v543_v1 = vlaneseq }
  0x59   : > { %1855 = vmatpush1.bf16.msra.mxu0 %v3519_v49  ;;  %v3578_v49 = vld [vmem:[#allocation2 + $0x18c] ss:$16 sps:$4 sm:$0xff]  }
  0x5a   : > { %1856 = vmatprep.subr.bf16.mxu0 %v3527_v50  ;;  %v3576_v50 = vld [vmem:[#allocation2 + $0x188] ss:$16 sps:$4 sm:$0xff]  }
  0x5b   : > { %2117 = vmatpush1.bf16.msra.mxu1 %v3522_v5 }
  0x5c   : > { %879 = vmatmul.mubr.bf16.gmra.mrb[8].mxu0 %v658_v51  ;;  %2118 = vmatprep.subr.bf16.mxu1 %v3530_v7 }
  0x5d   : > { %888 = vmatprep.mubr.bf16.mxu0 %v3928_v0  ;;  %1857 = vmatpush1.bf16.msra.mxu0 %v3525_v54  ;;  %v3582_v54 = vld [vmem:[#allocation2 + $0x1a8] ss:$16 sps:$4 sm:$0xff]  }
  0x5e   : > { %1858 = vmatprep.subr.bf16.mxu0 %v3533_v55  ;;  %1010 = vmatmul.mubr.bf16.gmra.mrb[8].mxu1 %v658_v51  ;;  %v3581_v51 = vld [vmem:[#allocation2 + $0x1a4] ss:$16 sps:$4 sm:$0xff]  }
  0x5f   : > { %1019 = vmatprep.mubr.bf16.mxu1 %v3928_v0  ;;  %2119 = vmatpush1.bf16.msra.mxu1 %v3528_v10  ;;  %v3587_v55 = vld [vmem:[#allocation2 + $0x1c4] ss:$16 sps:$4 sm:$0xff]  }
  0x60   : > { %2120 = vmatprep.subr.bf16.mxu1 %v3536_v12 }
  0x61   : > { %1859 = vmatpush1.bf16.msra.mxu0 %v3531_v60  ;;  %v3591_v60 = vld [vmem:[#allocation2 + $0x1e0] ss:$16 sps:$4 sm:$0xff]  }
  0x62   : > { %1860 = vmatprep.subr.bf16.mxu0 %v3539_v61  ;;  %v3594_v61 = vld [vmem:[#allocation2 + $0x1e8] ss:$16 sps:$4 sm:$0xff]  }
  0x63   : > { %2121 = vmatpush1.bf16.msra.mxu1 %v3534_v17 }
  0x64   : > { %889 = vmatmul.mubr.bf16.gmra.mrb[12].mxu0 %v659_v62  ;;  %2122 = vmatprep.subr.bf16.mxu1 %v3542_v18 }
  0x65   : > { %898 = vmatprep.mubr.bf16.mxu0 %v3928_v0  ;;  %1861 = vmatpush1.bf16.msra.mxu0 %v3537_v2  ;;  %v4164_v2 = vshrl.u32 %v543_v1, 7 }
  0x66   : > { %1862 = vmatprep.subr.bf16.mxu0 %v3545_v6  ;;  %1020 = vmatmul.mubr.bf16.gmra.mrb[12].mxu1 %v659_v62  ;;  %v3599_v62 = vld [vmem:[#allocation2 + $0x204] ss:$16 sps:$4 sm:$0xff]  }
  0x67   : > { %1029 = vmatprep.mubr.bf16.mxu1 %v3928_v0  ;;  %2123 = vmatpush1.bf16.msra.mxu1 %v3540_v21  ;;  %v4167_v3 = vsub.s32 0, %v4164_v2  ;;  %v4633_v5 = vsub.s32 1, %v4164_v2 }
  0x68   : > { %2124 = vmatprep.subr.bf16.mxu1 %v3548_v23 }
  0x69   : > { %1863 = vmatpush1.bf16.msra.mxu0 %v3543_v8  ;;  %v546_v6 = vrot.slane %v4172_v4, %v4167_v3  ;;  %v550_v7 = vrot.slane %v4172_v4, %v4633_v5 }
  0x6a   : > { %1864 = vmatprep.subr.bf16.mxu0 %v3551_v9 }
  0x6b   : > { %2125 = vmatpush1.bf16.msra.mxu1 %v3546_v28  ;;  %v563_v8 = vpack.c.bf16 %v546_v6, %v546_v6  ;;  %v564_v9 = vpack.c.bf16 %v550_v7, %v550_v7  ;;  %v3617_v7 = vld [vmem:[#allocation2 + $0x264] ss:$16 sps:$4 sm:$0xff]  }
  0x6c   : > { %899 = vmatmul.mubr.bf16.gmra.mrb[16].mxu0 %v660_v11  ;;  %2126 = vmatprep.subr.bf16.mxu1 %v3554_v29 }
  0x6d   : > { %908 = vmatprep.mubr.bf16.mxu0 %v3928_v0  ;;  %1865 = vmatpush1.bf16.msra.mxu0 %v3549_v13  ;;  %v568_v10 = vpack.i.b16 %v563_v8, %v563_v8  ;;  %v3620_v8 = vld [vmem:[#allocation2 + $0x26c] ss:$16 sps:$4 sm:$0xff]  }
  0x6e   : > { %1866 = vmatprep.subr.bf16.mxu0 %v3557_v14  ;;  %1030 = vmatmul.mubr.bf16.gmra.mrb[16].mxu1 %v660_v11  ;;  %v575_v11 = vpack.i.b16 %v564_v9, %v564_v9 }
  0x6f   : > { %1039 = vmatprep.mubr.bf16.mxu1 %v3928_v0  ;;  %2127 = vmatpush1.bf16.msra.mxu1 %v3552_v31  ;;  %v4181_v14 = vrot.slane %v568_v10, %v4167_v3 }
  0x70   : > { %2128 = vmatprep.subr.bf16.mxu1 %v3560_v33  ;;  %v4184_v16 = vrot.slane %v575_v11, %v4167_v3 }
  0x71   : > { %1867 = vmatpush1.bf16.msra.mxu0 %v3555_v19 }
  0x72   : > { %1868 = vmatprep.subr.bf16.mxu0 %v3563_v20 }
  0x73   : > { %2129 = vmatpush1.bf16.msra.mxu1 %v3558_v36  ;;  %v3597_v36 = vld [vmem:[#allocation2 + $0x200] ss:$16 sps:$4 sm:$0xff]  }
  0x74   : > { %909 = vmatmul.mubr.bf16.gmra.mrb[20].mxu0 %v661_v22  ;;  %2130 = vmatprep.subr.bf16.mxu1 %v3566_v37  ;;  %v3600_v37 = vld [vmem:[#allocation2 + $0x208] ss:$16 sps:$4 sm:$0xff]  }
  0x75   : > { %918 = vmatprep.mubr.bf16.mxu0 %v3928_v0  ;;  %1869 = vmatpush1.bf16.msra.mxu0 %v3561_v24 }
  0x76   : > { %1870 = vmatprep.subr.bf16.mxu0 %v3569_v25  ;;  %1040 = vmatmul.mubr.bf16.gmra.mrb[20].mxu1 %v661_v22 }
  0x77   : > { %1049 = vmatprep.mubr.bf16.mxu1 %v3928_v0  ;;  %2131 = vmatpush1.bf16.msra.mxu1 %v3564_v38 }
  0x78   : > { %2132 = vmatprep.subr.bf16.mxu1 %v3572_v40 }
  0x79   : > { %1871 = vmatpush1.bf16.msra.mxu0 %v3567_v30 }
  0x7a   : > { %1872 = vmatprep.subr.bf16.mxu0 %v3575_v48 }
  0x7b   : > { %2133 = vmatpush1.bf16.msra.mxu1 %v3570_v43  ;;  %v3605_v43 = vld [vmem:[#allocation2 + $0x224] ss:$16 sps:$4 sm:$0xff]  }
  0x7c   : > { %919 = vmatmul.mubr.bf16.gmra.mrb[24].mxu0 %v662_v32  ;;  %2134 = vmatprep.subr.bf16.mxu1 %v3578_v49 }
  0x7d   : > { %928 = vmatprep.mubr.bf16.mxu0 %v3928_v0  ;;  %1873 = vmatpush1.bf16.msra.mxu0 %v3573_v47 }
  0x7e   : > { %1050 = vmatmul.mubr.bf16.gmra.mrb[24].mxu1 %v662_v32  ;;  %1874 = vmatprep.subr.bf16.mxu0 %v3581_v51  ;;  %v3606_v51 = vld [vmem:[#allocation2 + $0x228] ss:$16 sps:$4 sm:$0xff]  }
  0x7f   : > { %1059 = vmatprep.mubr.bf16.mxu1 %v3928_v0  ;;  %2135 = vmatpush1.bf16.msra.mxu1 %v3576_v50  ;;  %v3603_v50 = vld [vmem:[#allocation2 + $0x220] ss:$16 sps:$4 sm:$0xff]  }
  0x80   : > { %2136 = vmatprep.subr.bf16.mxu1 %v3584_v52  ;;  %v3611_v52 = vld [vmem:[#allocation2 + $0x244] ss:$16 sps:$4 sm:$0xff]  }
  0x81   : > { %1875 = vmatpush1.bf16.msra.mxu0 %v3579_v53  ;;  %v3614_v53 = vld [vmem:[#allocation2 + $0x24c] ss:$16 sps:$4 sm:$0xff]  }
  0x82   : > { %1876 = vmatprep.subr.bf16.mxu0 %v3587_v55 }
  0x83   : > { %2137 = vmatpush1.bf16.msra.mxu1 %v3582_v54 }
  0x84   : > { %929 = vmatmul.mubr.bf16.gmra.mrb[28].mxu0 %v663_v39  ;;  %2138 = vmatprep.subr.bf16.mxu1 %v3590_v56 }
  0x85   : > { %938 = vmatprep.mubr.bf16.mxu0 %v3928_v0 }
  0x86   : > { %1060 = vmatmul.mubr.bf16.gmra.mrb[28].mxu1 %v663_v39 }
  0x87   : > { %1069 = vmatprep.mubr.bf16.mxu1 %v3928_v0  ;;  %2139 = vmatpush1.bf16.msra.mxu1 %v3588_v57 }
  0x88   : > { %2140 = vmatprep.subr.bf16.mxu1 %v3596_v59  ;;  %v3609_v59 = vld [vmem:[#allocation2 + $0x240] ss:$16 sps:$4 sm:$0xff]  }
  0x8b   : > { %2141 = vmatpush1.bf16.msra.mxu1 %v3594_v61 }
  0x8c   : > { %939 = vmatmul.mubr.bf16.gmra.mrb[32].mxu0 %v664_v44  ;;  %2241 = vmatprep.subr.bf16.mxu1 %v3602_v63 }
  0x8d   : > { %948 = vmatprep.mubr.bf16.mxu0 %v3928_v0 }
  0x8e   : > { %1070 = vmatmul.mubr.bf16.gmra.mrb[32].mxu1 %v664_v44  ;;  %v3608_v44 = vld [vmem:[#allocation2 + $0x22c] ss:$16 sps:$4 sm:$0xff]  }
  0x8f   : > { %1079 = vmatprep.mubr.bf16.mxu1 %v3928_v0  ;;  %v3585_v0 = vld [vmem:[#allocation2 + $0x1c0] ss:$16 sps:$4 sm:$0xff]  }
  0x90   : > { %1877 = vmatpush1.bf16.msra.mxu0 %v3585_v0 }
  0x91   : > { %1878 = vmatprep.subr.bf16.mxu0 %v3593_v58 }
  0x94   : > { %949 = vmatmul.mubr.bf16.gmra.mrb[36].mxu0 %v665_v46 }
  0x95   : > { %1879 = vmatpush1.bf16.msra.mxu0 %v3591_v60  ;;  %v3612_v60 = vld [vmem:[#allocation2 + $0x248] ss:$16 sps:$4 sm:$0xff]  }
  0x96   : > { %1080 = vmatmul.mubr.bf16.gmra.mrb[36].mxu1 %v665_v46  ;;  %1979 = vmatprep.subr.bf16.mxu0 %v3599_v62 }
 0x11f   : > { %v860_v12 = vpop.f32.mrb[0].mxu0 }
 0x120   : > { %v862_v13 = vpop.f32.mrb[1].mxu0 }
 0x121   : > { %v864_v15 = vpop.f32.mrb[2].mxu0  ;;  %v4190_v30 = vpop.f32.mrb[0].mxu1 }
 0x122   : > { %v1088_v17 = vpack.c.bf16 %v864_v15, %v860_v12  ;;  %v866_v18 = vpop.f32.mrb[3].mxu0  ;;  %v4192_v32 = vpop.f32.mrb[1].mxu1  ;;  %v3615_v15 = vld [vmem:[#allocation2 + $0x260] ss:$16 sps:$4 sm:$0xff]  }
 0x123   : > { %v1089_v19 = vpack.c.bf16 %v866_v18, %v862_v13  ;;  %v4194_v34 = vpop.f32.mrb[2].mxu1  ;;  %v3623_v18 = vld [vmem:[#allocation2 + $0x284] ss:$16 sps:$4 sm:$0xff]  }
 0x124   : > { %v1128_v20 = vadd.bf16 %v1088_v17, %v4181_v14  ;;  %v1090_v38 = vpack.c.bf16 %v4194_v34, %v4190_v30  ;;  %v4198_v39 = vpop.f32.mrb[3].mxu1  ;;  %v3618_v17 = vld [vmem:[#allocation2 + $0x268] ss:$16 sps:$4 sm:$0xff]  }
 0x125   : > { %v1129_v21 = vadd.bf16 %v1089_v19, %v4184_v16  ;;  %v1091_v45 = vpack.c.bf16 %v4198_v39, %v4192_v32  ;;  %v3626_v19 = vld [vmem:[#allocation2 + $0x28c] ss:$16 sps:$4 sm:$0xff]  }
 0x127   : > { %3725 = vtanh.bf16 %v1129_v21  ;;  %v870_v22 = vpop.f32.mrb[4].mxu0 }
 0x128   : > { %3727 = vtanh.bf16 %v1128_v20  ;;  %v872_v23 = vpop.f32.mrb[5].mxu0 }
 0x129   : > { %v874_v24 = vpop.f32.mrb[6].mxu0  ;;  %v4204_v54 = vpop.f32.mrb[4].mxu1 }
 0x12a   : > { %v1092_v25 = vpack.c.bf16 %v874_v24, %v870_v22  ;;  %v876_v26 = vpop.f32.mrb[7].mxu0  ;;  %v4206_v56 = vpop.f32.mrb[5].mxu1 }
 0x12b   : > { %v1093_v27 = vpack.c.bf16 %v876_v26, %v872_v23  ;;  %v4208_v57 = vpop.f32.mrb[6].mxu1  ;;  %v3621_v26 = vld [vmem:[#allocation2 + $0x280] ss:$16 sps:$4 sm:$0xff]  }
 0x12c   : > { %v1132_v28 = vadd.bf16 %v1092_v25, %v4181_v14  ;;  %v1094_v61 = vpack.c.bf16 %v4208_v57, %v4204_v54  ;;  %v4212_v62 = vpop.f32.mrb[7].mxu1  ;;  %v3697_v57 = vld [vmem:[%s4626_s5 + $0x48] sm:$0xff]  }
 0x12d   : > { %v1133_v29 = vadd.bf16 %v1093_v27, %v4184_v16  ;;  %v1095_v9 = vpack.c.bf16 %v4212_v62, %v4206_v56  ;;  %v3624_v27 = vld [vmem:[#allocation2 + $0x288] ss:$16 sps:$4 sm:$0xff]  }
 0x12f   : > { %3729 = vtanh.bf16 %v1133_v29  ;;  %v880_v31 = vpop.f32.mrb[8].mxu0 }
 0x130   : > { %3731 = vtanh.bf16 %v1132_v28  ;;  %v882_v33 = vpop.f32.mrb[9].mxu0 }
 0x131   : > { %v884_v35 = vpop.f32.mrb[10].mxu0  ;;  %v4218_v20 = vpop.f32.mrb[8].mxu1 }
 0x132   : > { %v3726_v40 = vpop.eup %3725  ;;  %v1096_v41 = vpack.c.bf16 %v884_v35, %v880_v31  ;;  %v886_v42 = vpop.f32.mrb[11].mxu0 }
 0x133   : > { %v3728_v46 = vpop.eup %3727  ;;  %v1097_v47 = vpack.c.bf16 %v886_v42, %v882_v33  ;;  %1880 = vmatprep.mubr.bf16.mxu0 %v3726_v40  ;;  %2142 = vmatprep.mubr.bf16.mxu1 %v3726_v40  ;;  %v4220_v22 = vpop.f32.mrb[9].mxu1 }
 0x134   : > { %v1136_v48 = vadd.bf16 %v1096_v41, %v4181_v14  ;;  %1881 = vmatmul.mubr.bf16.vlgmr.msra.gmra.mrb[40].mxu0 %v3728_v46  ;;  %2143 = vmatmul.mubr.bf16.vlgmr.msra.gmra.mrb[40].mxu1 %v3728_v46  ;;  %v4222_v24 = vpop.f32.mrb[10].mxu1  ;;  %v3627_v46 = vld [vmem:[#allocation2 + $0x2a0] ss:$16 sps:$4 sm:$0xff]  }
 0x135   : > { %v1137_v49 = vadd.bf16 %v1097_v47, %v4184_v16  ;;  %1980 = vmatpush1.bf16.msra.mxu0 %v3597_v36  ;;  %2242 = vmatpush1.bf16.msra.mxu1 %v3600_v37  ;;  %v1098_v28 = vpack.c.bf16 %v4222_v24, %v4218_v20  ;;  %v4226_v29 = vpop.f32.mrb[11].mxu1  ;;  %v3629_v36 = vld [vmem:[#allocation2 + $0x2a4] ss:$16 sps:$4 sm:$0xff]   ;;  %v3632_v37 = vld [vmem:[#allocation2 + $0x2ac] ss:$16 sps:$4 sm:$0xff]  }
 0x136   : > { %1981 = vmatprep.subr.bf16.mxu0 %v3605_v43  ;;  %2243 = vmatprep.subr.bf16.mxu1 %v3608_v44  ;;  %v1099_v40 = vpack.c.bf16 %v4226_v29, %v4220_v22  ;;  %v3630_v47 = vld [vmem:[#allocation2 + $0x2a8] ss:$16 sps:$4 sm:$0xff]   ;;  %v3696_v22 = vld [vmem:[%s4626_s5 + $0x80] sm:$0xff]   ;;  %v3701_v20 = vld [vmem:[%s4626_s5 + $0x50] sm:$0xff]  }
 0x137   : > { %3733 = vtanh.bf16 %v1137_v49  ;;  %v890_v55 = vpop.f32.mrb[12].mxu0  ;;  %v3638_v49 = vld [vmem:[#allocation2 + $0x2cc] ss:$16 sps:$4 sm:$0xff]   ;;  %v3703_v24 = vld [vmem:[%s4626_s5 + $0xd0] sm:$0xff]  }
 0x138   : > { %3735 = vtanh.bf16 %v1136_v48  ;;  %v892_v0 = vpop.f32.mrb[13].mxu0  ;;  %v3635_v48 = vld [vmem:[#allocation2 + $0x2c4] ss:$16 sps:$4 sm:$0xff]  }
 0x139   : > { %v894_v58 = vpop.f32.mrb[14].mxu0  ;;  %1982 = vmatpush1.bf16.msra.mxu0 %v3603_v50  ;;  %2244 = vmatpush1.bf16.msra.mxu1 %v3606_v51  ;;  %v4232_v50 = vpop.f32.mrb[12].mxu1 }
 0x13a   : > { %v3730_v63 = vpop.eup %3729  ;;  %v1100_v1 = vpack.c.bf16 %v894_v58, %v890_v55  ;;  %v896_v6 = vpop.f32.mrb[15].mxu0  ;;  %1983 = vmatprep.subr.bf16.mxu0 %v3611_v52  ;;  %2245 = vmatprep.subr.bf16.mxu1 %v3614_v53  ;;  %v3633_v58 = vld [vmem:[#allocation2 + $0x2c0] ss:$16 sps:$4 sm:$0xff]  }
 0x13b   : > { %v3732_v10 = vpop.eup %3731  ;;  %v1101_v11 = vpack.c.bf16 %v896_v6, %v892_v0  ;;  %1890 = vmatprep.mubr.bf16.mxu0 %v3730_v63  ;;  %2152 = vmatprep.mubr.bf16.mxu1 %v3730_v63  ;;  %v4234_v52 = vpop.f32.mrb[13].mxu1 }
 0x13c   : > { %v1140_v12 = vadd.bf16 %v1100_v1, %v4181_v14  ;;  %1891 = vmatmul.mubr.bf16.gmra.mrb[44].mxu0 %v3732_v10  ;;  %2153 = vmatmul.mubr.bf16.gmra.mrb[44].mxu1 %v3732_v10  ;;  %v4236_v55 = vpop.f32.mrb[14].mxu1  ;;  %v3644_v10 = vld [vmem:[#allocation2 + $0x2ec] ss:$16 sps:$4 sm:$0xff]  }
 0x13d   : > { %v1141_v13 = vadd.bf16 %v1101_v11, %v4184_v16  ;;  %1984 = vmatpush1.bf16.msra.mxu0 %v3609_v59  ;;  %2246 = vmatpush1.bf16.msra.mxu1 %v3612_v60  ;;  %v3636_v59 = vld [vmem:[#allocation2 + $0x2c8] ss:$16 sps:$4 sm:$0xff]   ;;  %v1102_v60 = vpack.c.bf16 %v4236_v55, %v4232_v50  ;;  %v4240_v63 = vpop.f32.mrb[15].mxu1  ;;  %v3709_v50 = vld [vmem:[%s4626_s5 + $0x60] sm:$0xff]  }
 0x13e   : > { %1985 = vmatprep.subr.bf16.mxu0 %v3617_v7  ;;  %2247 = vmatprep.subr.bf16.mxu1 %v3620_v8  ;;  %v3641_v8 = vld [vmem:[#allocation2 + $0x2e4] ss:$16 sps:$4 sm:$0xff]   ;;  %v1103_v11 = vpack.c.bf16 %v4240_v63, %v4234_v52  ;;  %v3698_v52 = vld [vmem:[%s4626_s5 + $0x8] sm:$0xff]  }
 0x13f   : > { %3737 = vtanh.bf16 %v1141_v13  ;;  %v900_v21 = vpop.f32.mrb[16].mxu0  ;;  %v3700_v63 = vld [vmem:[%s4626_s5 + $0x88] sm:$0xff]   ;;  %v3711_v55 = vld [vmem:[%s4626_s5 + $0xe0] sm:$0xff]  }
 0x140   : > { %3739 = vtanh.bf16 %v1140_v12  ;;  %v902_v23 = vpop.f32.mrb[17].mxu0 }
 0x141   : > { %v904_v25 = vpop.f32.mrb[18].mxu0  ;;  %1986 = vmatpush1.bf16.msra.mxu0 %v3615_v15  ;;  %2248 = vmatpush1.bf16.msra.mxu1 %v3618_v17 }
 0x142   : > { %v3734_v31 = vpop.eup %3733  ;;  %v1104_v33 = vpack.c.bf16 %v904_v25, %v900_v21  ;;  %v906_v35 = vpop.f32.mrb[19].mxu0  ;;  %1987 = vmatprep.subr.bf16.mxu0 %v3623_v18  ;;  %2249 = vmatprep.subr.bf16.mxu1 %v3626_v19  ;;  %v3639_v18 = vld [vmem:[#allocation2 + $0x2e0] ss:$16 sps:$4 sm:$0xff]   ;;  %v3642_v19 = vld [vmem:[#allocation2 + $0x2e8] ss:$16 sps:$4 sm:$0xff]  }
 0x143   : > { %v3736_v41 = vpop.eup %3735  ;;  %v1105_v42 = vpack.c.bf16 %v906_v35, %v902_v23  ;;  %1900 = vmatprep.mubr.bf16.mxu0 %v3734_v31  ;;  %2162 = vmatprep.mubr.bf16.mxu1 %v3734_v31  ;;  %v3647_v21 = vld [vmem:[#allocation2 + $0x304] ss:$16 sps:$4 sm:$0xff]   ;;  %v3650_v23 = vld [vmem:[#allocation2 + $0x30c] ss:$16 sps:$4 sm:$0xff]   ;;  %v4246_v25 = vpop.f32.mrb[16].mxu1 }
 0x144   : > { %v1144_v43 = vadd.bf16 %v1104_v33, %v4181_v14  ;;  %1901 = vmatmul.mubr.bf16.gmra.mrb[48].mxu0 %v3736_v41  ;;  %2163 = vmatmul.mubr.bf16.gmra.mrb[48].mxu1 %v3736_v41 }
 0x145   : > { %v1145_v44 = vadd.bf16 %v1105_v42, %v4184_v16  ;;  %1988 = vmatpush1.bf16.msra.mxu0 %v3621_v26  ;;  %2250 = vmatpush1.bf16.msra.mxu1 %v3624_v27  ;;  %v4248_v27 = vpop.f32.mrb[17].mxu1 }
 0x146   : > { %1989 = vmatprep.subr.bf16.mxu0 %v3629_v36  ;;  %2251 = vmatprep.subr.bf16.mxu1 %v3632_v37  ;;  %v4250_v33 = vpop.f32.mrb[18].mxu1  ;;  %v3645_v36 = vld [vmem:[#allocation2 + $0x300] ss:$16 sps:$4 sm:$0xff]   ;;  %v3648_v37 = vld [vmem:[#allocation2 + $0x308] ss:$16 sps:$4 sm:$0xff]  }
 0x147   : > { %3741 = vtanh.bf16 %v1145_v44  ;;  %v910_v51 = vpop.f32.mrb[20].mxu0  ;;  %v4254_v42 = vpop.f32.mrb[19].mxu1 }
 0x148   : > { %3743 = vtanh.bf16 %v1144_v43  ;;  %v912_v53 = vpop.f32.mrb[21].mxu0 }
 0x149   : > { %v914_v0 = vpop.f32.mrb[22].mxu0  ;;  %1990 = vmatpush1.bf16.msra.mxu0 %v3627_v46  ;;  %2252 = vmatpush1.bf16.msra.mxu1 %v3630_v47  ;;  %v3653_v47 = vld [vmem:[#allocation2 + $0x324] ss:$16 sps:$4 sm:$0xff]  }
 0x14a   : > { %v3738_v1 = vpop.eup %3737  ;;  %v1108_v6 = vpack.c.bf16 %v914_v0, %v910_v51  ;;  %v916_v7 = vpop.f32.mrb[23].mxu0  ;;  %1991 = vmatprep.subr.bf16.mxu0 %v3635_v48  ;;  %2253 = vmatprep.subr.bf16.mxu1 %v3638_v49  ;;  %v3656_v48 = vld [vmem:[#allocation2 + $0x32c] ss:$16 sps:$4 sm:$0xff]   ;;  %v1107_v49 = vpack.c.bf16 %v4254_v42, %v4248_v27 }
 0x14b   : > { %v3740_v12 = vpop.eup %3739  ;;  %v1109_v13 = vpack.c.bf16 %v916_v7, %v912_v53  ;;  %1910 = vmatprep.mubr.bf16.mxu0 %v3738_v1  ;;  %2172 = vmatprep.mubr.bf16.mxu1 %v3738_v1  ;;  %v3654_v1 = vld [vmem:[#allocation2 + $0x328] ss:$16 sps:$4 sm:$0xff]   ;;  %v3662_v7 = vld [vmem:[#allocation2 + $0x34c] ss:$16 sps:$4 sm:$0xff]  }
 0x14c   : > { %v1148_v15 = vadd.bf16 %v1108_v6, %v4181_v14  ;;  %1911 = vmatmul.mubr.bf16.gmra.mrb[52].mxu0 %v3740_v12  ;;  %2173 = vmatmul.mubr.bf16.gmra.mrb[52].mxu1 %v3740_v12  ;;  %v3659_v6 = vld [vmem:[#allocation2 + $0x344] ss:$16 sps:$4 sm:$0xff]   ;;  %v4632_v12 = vsub.s32 3, %v4164_v2  ;;  %v3706_v27 = vld [vmem:[%s4626_s5 + $0x18] sm:$0xff]  }
 0x14d   : > { %v1149_v17 = vadd.bf16 %v1109_v13, %v4184_v16  ;;  %1992 = vmatpush1.bf16.msra.mxu0 %v3633_v58  ;;  %2254 = vmatpush1.bf16.msra.mxu1 %v3636_v59  ;;  %v3651_v59 = vld [vmem:[#allocation2 + $0x320] ss:$16 sps:$4 sm:$0xff]   ;;  %v3708_v42 = vld [vmem:[%s4626_s5 + $0x98] sm:$0xff]  }
 0x14e   : > { %1993 = vmatprep.subr.bf16.mxu0 %v3641_v8  ;;  %2255 = vmatprep.subr.bf16.mxu1 %v3644_v10  ;;  %v4260_v8 = vpop.f32.mrb[20].mxu1 }
 0x14f   : > { %3745 = vtanh.bf16 %v1149_v17  ;;  %v920_v26 = vpop.f32.mrb[24].mxu0  ;;  %v4263_v13 = vpop.f32.mrb[21].mxu1 }
 0x150   : > { %3747 = vtanh.bf16 %v1148_v15  ;;  %v922_v31 = vpop.f32.mrb[25].mxu0  ;;  %v4265_v17 = vpop.f32.mrb[22].mxu1 }
 0x151   : > { %v924_v35 = vpop.f32.mrb[26].mxu0  ;;  %1994 = vmatpush1.bf16.msra.mxu0 %v3639_v18  ;;  %2256 = vmatpush1.bf16.msra.mxu1 %v3642_v19  ;;  %v3657_v19 = vld [vmem:[#allocation2 + $0x340] ss:$16 sps:$4 sm:$0xff]  }
 0x152   : > { %v3742_v43 = vpop.eup %3741  ;;  %v1112_v44 = vpack.c.bf16 %v924_v35, %v920_v26  ;;  %v926_v46 = vpop.f32.mrb[27].mxu0  ;;  %1995 = vmatprep.subr.bf16.mxu0 %v3647_v21  ;;  %2257 = vmatprep.subr.bf16.mxu1 %v3650_v23  ;;  %v3660_v21 = vld [vmem:[#allocation2 + $0x348] ss:$16 sps:$4 sm:$0xff]  }
 0x153   : > { %v3744_v51 = vpop.eup %3743  ;;  %v1113_v53 = vpack.c.bf16 %v926_v46, %v922_v31  ;;  %1920 = vmatprep.mubr.bf16.mxu0 %v3742_v43  ;;  %2182 = vmatprep.mubr.bf16.mxu1 %v3742_v43  ;;  %v4269_v26 = vpop.f32.mrb[23].mxu1  ;;  %v3668_v43 = vld [vmem:[#allocation2 + $0x36c] ss:$16 sps:$4 sm:$0xff]  }
 0x154   : > { %v1152_v0 = vadd.bf16 %v1112_v44, %v4181_v14  ;;  %1921 = vmatmul.mubr.bf16.gmra.mrb[56].mxu0 %v3744_v51  ;;  %2183 = vmatmul.mubr.bf16.gmra.mrb[56].mxu1 %v3744_v51  ;;  %v1111_v44 = vpack.c.bf16 %v4269_v26, %v4263_v13  ;;  %v3714_v13 = vld [vmem:[%s4626_s5 + $0x28] sm:$0xff]  }
 0x155   : > { %v1153_v58 = vadd.bf16 %v1113_v53, %v4184_v16  ;;  %1996 = vmatpush1.bf16.msra.mxu0 %v3645_v36  ;;  %2258 = vmatpush1.bf16.msra.mxu1 %v3648_v37  ;;  %v3665_v37 = vld [vmem:[#allocation2 + $0x364] ss:$16 sps:$4 sm:$0xff]   ;;  %v3716_v26 = vld [vmem:[%s4626_s5 + $0xa8] sm:$0xff]  }
 0x156   : > { %1997 = vmatprep.subr.bf16.mxu0 %v3653_v47  ;;  %2259 = vmatprep.subr.bf16.mxu1 %v3656_v48  ;;  %v558_v48 = vrot.slane %v4172_v4, %v4632_v12 }
 0x157   : > { %3749 = vtanh.bf16 %v1153_v58  ;;  %v930_v10 = vpop.f32.mrb[28].mxu0  ;;  %v3666_v58 = vld [vmem:[#allocation2 + $0x368] ss:$16 sps:$4 sm:$0xff]  }
 0x158   : > { %3751 = vtanh.bf16 %v1152_v0  ;;  %v932_v15 = vpop.f32.mrb[29].mxu0  ;;  %v3663_v0 = vld [vmem:[#allocation2 + $0x360] ss:$16 sps:$4 sm:$0xff]  }
 0x159   : > { %v934_v18 = vpop.f32.mrb[30].mxu0  ;;  %1998 = vmatpush1.bf16.msra.mxu0 %v3651_v59  ;;  %2260 = vmatpush1.bf16.msra.mxu1 %v3654_v1  ;;  %v3671_v59 = vld [vmem:[#allocation2 + $0x384] ss:$16 sps:$4 sm:$0xff]   ;;  %v3674_v1 = vld [vmem:[#allocation2 + $0x38c] ss:$16 sps:$4 sm:$0xff]  }
 0x15a   : > { %v3746_v31 = vpop.eup %3745  ;;  %v1116_v35 = vpack.c.bf16 %v934_v18, %v930_v10  ;;  %v936_v36 = vpop.f32.mrb[31].mxu0  ;;  %1999 = vmatprep.subr.bf16.mxu0 %v3659_v6  ;;  %2261 = vmatprep.subr.bf16.mxu1 %v3662_v7  ;;  %v566_v10 = vpack.c.bf16 %v558_v48, %v558_v48 }
 0x15b   : > { %v3748_v46 = vpop.eup %3747  ;;  %v1117_v47 = vpack.c.bf16 %v936_v36, %v932_v15  ;;  %1930 = vmatprep.mubr.bf16.mxu0 %v3746_v31  ;;  %2192 = vmatprep.mubr.bf16.mxu1 %v3746_v31  ;;  %v4278_v6 = vpop.f32.mrb[24].mxu1  ;;  %v4634_v31 = vsub.s32 2, %v4164_v2  ;;  %v3672_v36 = vld [vmem:[#allocation2 + $0x388] ss:$16 sps:$4 sm:$0xff]  }
 0x15c   : > { %v1156_v51 = vadd.bf16 %v1116_v35, %v4181_v14  ;;  %1931 = vmatmul.mubr.bf16.gmra.mrb[60].mxu0 %v3748_v46  ;;  %2193 = vmatmul.mubr.bf16.gmra.mrb[60].mxu1 %v3748_v46  ;;  %v4280_v15 = vpop.f32.mrb[25].mxu1 }
 0x15d   : > { %v1157_v53 = vadd.bf16 %v1117_v47, %v4184_v16  ;;  %2000 = vmatpush1.bf16.msra.mxu0 %v3657_v19  ;;  %2262 = vmatpush1.bf16.msra.mxu1 %v3660_v21  ;;  %v4283_v35 = vpop.f32.mrb[26].mxu1  ;;  %v3669_v21 = vld [vmem:[#allocation2 + $0x380] ss:$16 sps:$4 sm:$0xff]  }
 0x15e   : > { %2001 = vmatprep.subr.bf16.mxu0 %v3665_v37  ;;  %2263 = vmatprep.subr.bf16.mxu1 %v3668_v43  ;;  %v4287_v43 = vpop.f32.mrb[27].mxu1  ;;  %v3684_v37 = vld [vmem:[#allocation2 + $0x3c8] ss:$16 sps:$4 sm:$0xff]  }
 0x15f   : > { %3753 = vtanh.bf16 %v1157_v53  ;;  %v940_v7 = vpop.f32.mrb[32].mxu0  ;;  %v3680_v53 = vld [vmem:[#allocation2 + $0x3ac] ss:$16 sps:$4 sm:$0xff]  }
 0x160   : > { %3755 = vtanh.bf16 %v1156_v51  ;;  %v942_v18 = vpop.f32.mrb[33].mxu0  ;;  %v3677_v51 = vld [vmem:[#allocation2 + $0x3a4] ss:$16 sps:$4 sm:$0xff]  }
 0x161   : > { %v944_v19 = vpop.f32.mrb[34].mxu0  ;;  %2002 = vmatpush1.bf16.msra.mxu0 %v3663_v0  ;;  %2264 = vmatpush1.bf16.msra.mxu1 %v3666_v58  ;;  %v589_v58 = vpack.i.b16 %v566_v10, %v566_v10 }
 0x162   : > { %v3750_v46 = vpop.eup %3749  ;;  %v1120_v47 = vpack.c.bf16 %v944_v19, %v940_v7  ;;  %v946_v48 = vpop.f32.mrb[35].mxu0  ;;  %2003 = vmatprep.subr.bf16.mxu0 %v3671_v59  ;;  %2265 = vmatprep.subr.bf16.mxu1 %v3674_v1  ;;  %v554_v7 = vrot.slane %v4172_v4, %v4634_v31  ;;  %v3675_v1 = vld [vmem:[#allocation2 + $0x3a0] ss:$16 sps:$4 sm:$0xff]   ;;  %v3678_v19 = vld [vmem:[#allocation2 + $0x3a8] ss:$16 sps:$4 sm:$0xff]  }
 0x163   : > { %v3752_v5 = vpop.eup %3751  ;;  %v1121_v0 = vpack.c.bf16 %v946_v48, %v942_v18  ;;  %1940 = vmatprep.mubr.bf16.mxu0 %v3750_v46  ;;  %2202 = vmatprep.mubr.bf16.mxu1 %v3750_v46  ;;  %v3683_v18 = vld [vmem:[#allocation2 + $0x3c4] ss:$16 sps:$4 sm:$0xff]   ;;  %v3686_v48 = vld [vmem:[#allocation2 + $0x3cc] ss:$16 sps:$4 sm:$0xff]   ;;  %v4296_v46 = vpop.f32.mrb[28].mxu1 }
 0x164   : > { %v1160_v23 = vadd.bf16 %v1120_v47, %v4181_v14  ;;  %1941 = vmatmul.mubr.bf16.gmra.mrb[64].mxu0 %v3752_v5  ;;  %2203 = vmatmul.mubr.bf16.gmra.mrb[64].mxu1 %v3752_v5  ;;  %v4299_v5 = vrot.slane %v589_v58, %v4167_v3  ;;  %v4301_v47 = vpop.f32.mrb[29].mxu1 }
 0x165   : > { %v1161_v59 = vadd.bf16 %v1121_v0, %v4184_v16  ;;  %2004 = vmatpush1.bf16.msra.mxu0 %v3669_v21  ;;  %2266 = vmatpush1.bf16.msra.mxu1 %v3672_v36  ;;  %v565_v21 = vpack.c.bf16 %v554_v7, %v554_v7  ;;  %v4303_v36 = vpop.f32.mrb[30].mxu1 }
 0x166   : > { %2005 = vmatprep.subr.bf16.mxu0 %v3677_v51  ;;  %2267 = vmatprep.subr.bf16.mxu1 %v3680_v53  ;;  %v3681_v53 = vld [vmem:[#allocation2 + $0x3c0] ss:$16 sps:$4 sm:$0xff]   ;;  %v4307_v12 = vpop.f32.mrb[31].mxu1  ;;  %v1139_v30 = vadd.bf16 %v1099_v40, %v4299_v5  ;;  %v1143_v54 = vadd.bf16 %v1103_v11, %v4299_v5 }
 0x167   : > { %3757 = vtanh.bf16 %v1161_v59  ;;  %v950_v10 = vpop.f32.mrb[36].mxu0  ;;  %v1118_v59 = vpack.c.bf16 %v4303_v36, %v4296_v46  ;;  %v1119_v7 = vpack.c.bf16 %v4307_v12, %v4301_v47  ;;  %v3702_v11 = vld [vmem:[%s4626_s5 + $0x10] sm:$0xff]  }
 0x168   : > { %3759 = vtanh.bf16 %v1160_v23  ;;  %v1124_v4 = vpack.c.bf16 %v950_v10, %v950_v10  ;;  %v952_v0 = vpop.f32.mrb[37].mxu0  ;;  %v3689_v23 = vld [vmem:[#allocation2 + $0x3e4] ss:$16 sps:$4 sm:$0xff]   ;;  %v3692_v10 = vld [vmem:[#allocation2 + $0x3ec] ss:$16 sps:$4 sm:$0xff]  }
 0x169   : > { %v1125_v31 = vpack.c.bf16 %v952_v0, %v952_v0  ;;  %v954_v51 = vpop.f32.mrb[38].mxu0  ;;  %2006 = vmatpush1.bf16.msra.mxu0 %v3675_v1  ;;  %2268 = vmatpush1.bf16.msra.mxu1 %v3678_v19  ;;  %v1131_v19 = vadd.bf16 %v1091_v45, %v4299_v5 }
 0x16a   : > { %v3754_v58 = vpop.eup %3753  ;;  %v955_v41 = vpop.f32.mrb[39].mxu0  ;;  %2007 = vmatprep.subr.bf16.mxu0 %v3683_v18  ;;  %2269 = vmatprep.subr.bf16.mxu1 %v3686_v48  ;;  %v1164_v51 = vadd.bf16 %v1124_v4, %v4181_v14  ;;  %v3687_v18 = vld [vmem:[#allocation2 + $0x3e0] ss:$16 sps:$4 sm:$0xff]   ;;  %v3690_v48 = vld [vmem:[#allocation2 + $0x3e8] ss:$16 sps:$4 sm:$0xff]  }
 0x16b   : > { %v3756_v0 = vpop.eup %3755  ;;  %v1165_v1 = vadd.bf16 %v1125_v31, %v4184_v16  ;;  %1950 = vmatprep.mubr.bf16.mxu0 %v3754_v58  ;;  %2212 = vmatprep.mubr.bf16.mxu1 %v3754_v58  ;;  %v582_v41 = vpack.i.b16 %v565_v21, %v565_v21  ;;  %v4317_v16 = vpop.f32.mrb[32].mxu1  ;;  %v3693_v31 = vld [vmem:[%s4626_s5 + $0x40] sm:$0xff]  }
 0x16c   : > { %1951 = vmatmul.mubr.bf16.gmra.mrb[68].mxu0 %v3756_v0  ;;  %2213 = vmatmul.mubr.bf16.gmra.mrb[68].mxu1 %v3756_v0  ;;  %v3695_v14 = vld [vmem:[%s4626_s5 + $0xc0] sm:$0xff]   ;;  %v4325_v32 = vpop.f32.mrb[33].mxu1 }
 0x16d   : > { %3761 = vtanh.bf16 %v1165_v1  ;;  %2008 = vmatpush1.bf16.msra.mxu0 %v3681_v53  ;;  %2270 = vmatpush1.bf16.msra.mxu1 %v3684_v37  ;;  %v4328_v39 = vrot.slane %v582_v41, %v4167_v3  ;;  %v4330_v45 = vpop.f32.mrb[34].mxu1 }
 0x16e   : > { %2009 = vmatprep.subr.bf16.mxu0 %v3689_v23  ;;  %2271 = vmatprep.subr.bf16.mxu1 %v3692_v10  ;;  %3763 = vtanh.bf16 %v1131_v19  ;;  %v1122_v37 = vpack.c.bf16 %v4330_v45, %v4317_v16  ;;  %v4334_v4 = vpop.f32.mrb[35].mxu1  ;;  %v1135_v23 = vadd.bf16 %v1095_v9, %v4299_v5  ;;  %v3694_v9 = vld [vmem:[%s4626_s5] sm:$0xff]  }
 0x16f   : > { %3765 = vtanh.bf16 %v1164_v51  ;;  %v1123_v53 = vpack.c.bf16 %v4334_v4, %v4325_v32  ;;  %v1130_v10 = vadd.bf16 %v1090_v38, %v4328_v39  ;;  %v4346_v0 = vpop.f32.mrb[36].mxu1  ;;  %v1134_v34 = vadd.bf16 %v1094_v61, %v4328_v39  ;;  %v3699_v61 = vld [vmem:[%s4626_s5 + $0xc8] sm:$0xff]  }
 0x170   : > { %3767 = vtanh.bf16 %v1135_v23  ;;  %v4348_v1 = vpop.f32.mrb[37].mxu1  ;;  %v1138_v40 = vadd.bf16 %v1098_v28, %v4328_v39  ;;  %v3712_v23 = vld [vmem:[%s4626_s5 + $0xa0] sm:$0xff]   ;;  %v1158_v12 = vadd.bf16 %v1118_v59, %v4328_v39  ;;  %v1162_v32 = vadd.bf16 %v1122_v37, %v4328_v39  ;;  %v3717_v37 = vld [vmem:[%s4626_s5 + $0x70] sm:$0xff]  }
 0x171   : > { %2010 = vmatpush1.bf16.msra.mxu0 %v3687_v18  ;;  %2272 = vmatpush1.bf16.msra.mxu1 %v3690_v48  ;;  %3769 = vtanh.bf16 %v1130_v10  ;;  %v1085_v51 = vpop.f32.mrb[38].mxu1  ;;  %v3704_v18 = vld [vmem:[%s4626_s5 + $0x90] sm:$0xff]   ;;  %v1126_v46 = vpack.c.bf16 %v4346_v0, %v4346_v0 }
 0x172   : > { %v3758_v21 = vpop.eup %3757  ;;  %3199 = vmatprep.subr.bf16.mxu0 %v3693_v31  ;;  %3275 = vmatprep.subr.bf16.mxu1 %v3695_v14  ;;  %v1086_v41 = vpop.f32.mrb[39].mxu1  ;;  %3771 = vtanh.bf16 %v1139_v30  ;;  %v1147_v31 = vadd.bf16 %v1107_v49, %v4299_v5  ;;  %v3705_v14 = vld [vmem:[%s4626_s5 + $0x58] sm:$0xff]   ;;  %v3710_v49 = vld [vmem:[%s4626_s5 + $0x20] sm:$0xff]   ;;  %v3713_v51 = vld [vmem:[%s4626_s5 + $0x68] sm:$0xff]  }
 0x173   : > { %v3760_v58 = vpop.eup %3759  ;;  %1960 = vmatprep.mubr.bf16.mxu0 %v3758_v21  ;;  %2222 = vmatprep.mubr.bf16.mxu1 %v3758_v21  ;;  %3773 = vtanh.bf16 %v1134_v34  ;;  %v3707_v21 = vld [vmem:[%s4626_s5 + $0xd8] sm:$0xff]   ;;  %v3715_v41 = vld [vmem:[%s4626_s5 + $0xe8] sm:$0xff]   ;;  %v4642_v34 = vpack.c.bf16 %v4265_v17, %v4260_v8  ;;  %v1166_v59 = vadd.bf16 %v1126_v46, %v4328_v39  ;;  %v3720_v0 = vld [vmem:[%s4626_s5 + $0xb0] sm:$0xff]  }
 0x174   : > { %1961 = vmatmul.mubr.bf16.gmra.mrb[72].mxu0 %v3760_v58  ;;  %2223 = vmatmul.mubr.bf16.gmra.mrb[72].mxu1 %v3760_v58  ;;  %3775 = vtanh.bf16 %v1143_v54  ;;  %v1142_v58 = vadd.bf16 %v1102_v60, %v4328_v39  ;;  %v1163_v54 = vadd.bf16 %v1123_v53, %v4299_v5  ;;  %v3719_v53 = vld [vmem:[%s4626_s5 + $0xf0] sm:$0xff]  }
 0x175   : > { %3777 = vtanh.bf16 %v1138_v40  ;;  %v3724_v40 = vld [vmem:[%s4626_s5 + $0xb8] sm:$0xff]  }
 0x176   : > { %3779 = vtanh.bf16 %v1147_v31 }
 0x177   : > { %3781 = vtanh.bf16 %v1142_v58 }
 0x178   : > { %v3762_v19 = vpop.eup %3761 }
 0x179   : > { %1970 = vmatprep.mubr.bf16.mxu0 %v3762_v19  ;;  %2232 = vmatprep.mubr.bf16.mxu1 %v3762_v19  ;;  %v3764_v56 = vpop.eup %3763  ;;  %v1151_v19 = vadd.bf16 %v1111_v44, %v4299_v5  ;;  %v4641_v44 = vpack.c.bf16 %v4287_v43, %v4280_v15  ;;  %v4643_v15 = vpack.c.bf16 %v4283_v35, %v4278_v6 }
 0x17a   : > { %v3766_v62 = vpop.eup %3765  ;;  %v1127_v6 = vpack.c.bf16 %v4348_v1, %v4348_v1  ;;  %v3721_v1 = vld [vmem:[%s4626_s5 + $0x78] sm:$0xff]  }
 0x17b   : > { %v3768_v38 = vpop.eup %3767  ;;  %3783 = vtanh.bf16 %v1151_v19  ;;  %v1155_v30 = vadd.bf16 %v4641_v44, %v4299_v5  ;;  %v1154_v43 = vadd.bf16 %v4643_v15, %v4328_v39 }
 0x17c   : > { %1971 = vmatmul.mubr.bf16.gmra.mrb[76].mxu0 %v3766_v62  ;;  %2233 = vmatmul.mubr.bf16.gmra.mrb[76].mxu1 %v3766_v62  ;;  %v3770_v29 = vpop.eup %3769 }
 0x17d   : > { %2011 = vmatprep.mubr.bf16.mxu0 %v3764_v56  ;;  %2273 = vmatprep.mubr.bf16.mxu1 %v3764_v56  ;;  %v3772_v28 = vpop.eup %3771  ;;  %v4640_v56 = vpack.c.bf16 %v4250_v33, %v4246_v25 }
 0x17e   : > { %v3774_v48 = vpop.eup %3773 }
 0x17f   : > { %v3776_v60 = vpop.eup %3775  ;;  %v1146_v62 = vadd.bf16 %v4640_v56, %v4328_v39 }
 0x180   : > { %v3778_v10 = vpop.eup %3777 }
 0x181   : > { %3785 = vtanh.bf16 %v1146_v62  ;;  %v3780_v25 = vpop.eup %3779 }
 0x182   : > { %v3782_v33 = vpop.eup %3781  ;;  %3787 = vtanh.bf16 %v1155_v30 }
 0x184   : > { %2012 = vmatmul.mubr.bf16.vlgmr.msra.gmra.mrb[40].mxu0 %v3770_v29  ;;  %2274 = vmatmul.mubr.bf16.vlgmr.msra.gmra.mrb[40].mxu1 %v3770_v29  ;;  %v1159_v29 = vadd.bf16 %v1119_v7, %v4299_v5  ;;  %v1167_v7 = vadd.bf16 %v1127_v6, %v4299_v5 }
 0x185   : > { %2021 = vmatprep.mubr.bf16.mxu0 %v3768_v38  ;;  %2283 = vmatprep.mubr.bf16.mxu1 %v3768_v38  ;;  %v1150_v38 = vadd.bf16 %v4642_v34, %v4328_v39  ;;  %v3718_v39 = vld [vmem:[%s4626_s5 + $0x30] sm:$0xff]  }
 0x186   : > { %3200 = vmatpush3.bf16.msra.mxu0 %v3694_v9  ;;  %3276 = vmatpush3.bf16.msra.mxu1 %v3696_v22  ;;  %v3784_v9 = vpop.eup %3783 }
 0x187   : > { %3201 = vmatprep.subr.bf16.mxu0 %v3697_v57  ;;  %3277 = vmatprep.subr.bf16.mxu1 %v3699_v61  ;;  %3789 = vtanh.bf16 %v1150_v38  ;;  %v3723_v57 = vld [vmem:[%s4626_s5 + $0xf8] sm:$0xff]  }
 0x188   : > { %3791 = vtanh.bf16 %v1159_v29  ;;  %v3722_v61 = vld [vmem:[%s4626_s5 + $0x38] sm:$0xff]  }
 0x189   : > { %3793 = vtanh.bf16 %v1154_v43 }
 0x18a   : > { %3202 = vmatpush3.bf16.msra.mxu0 %v3698_v52  ;;  %3278 = vmatpush3.bf16.msra.mxu1 %v3700_v63  ;;  %3795 = vtanh.bf16 %v1163_v54  ;;  %v595_v52 = vld [vmem:[%s4625_s4] sm:$0xf] }
 0x18b   : > { %3203 = vmatprep.subr.bf16.mxu0 %v3701_v20  ;;  %3279 = vmatprep.subr.bf16.mxu1 %v3703_v24  ;;  %3797 = vtanh.bf16 %v1158_v12  ;;  %v600_v63 = vrot.slane %v595_v52, %v4167_v3  ;;  %v4644_v20 = vsub.s32 1, %v4164_v2 }
 0x18c   : > { %2022 = vmatmul.mubr.bf16.gmra.mrb[44].mxu0 %v3774_v48  ;;  %2284 = vmatmul.mubr.bf16.gmra.mrb[44].mxu1 %v3774_v48  ;;  %v3786_v22 = vpop.eup %3785  ;;  %3799 = vtanh.bf16 %v1167_v7 }
 0x18d   : > { %2031 = vmatprep.mubr.bf16.mxu0 %v3772_v28  ;;  %2293 = vmatprep.mubr.bf16.mxu1 %v3772_v28  ;;  %v3788_v8 = vpop.eup %3787  ;;  %3801 = vtanh.bf16 %v1162_v32  ;;  %v604_v24 = vrot.slane %v595_v52, %v4644_v20  ;;  %v4645_v28 = vsub.s32 3, %v4164_v2  ;;  %v617_v31 = vpack.c.bf16 %v600_v63, %v600_v63 }
 0x18e   : > { %3204 = vmatpush3.bf16.msra.mxu0 %v3702_v11  ;;  %3280 = vmatpush3.bf16.msra.mxu1 %v3704_v18  ;;  %3803 = vtanh.bf16 %v1166_v59  ;;  %v4646_v18 = vsub.s32 2, %v4164_v2 }
 0x18f   : > { %3205 = vmatprep.subr.bf16.mxu0 %v3705_v14  ;;  %3281 = vmatprep.subr.bf16.mxu1 %v3707_v21  ;;  %v612_v11 = vrot.slane %v595_v52, %v4645_v28  ;;  %v618_v14 = vpack.c.bf16 %v604_v24, %v604_v24 }
 0x190   : > { %v608_v48 = vrot.slane %v595_v52, %v4646_v18 }
 0x191   : > { %v620_v21 = vpack.c.bf16 %v612_v11, %v612_v11 }
 0x192   : > { %3206 = vmatpush3.bf16.msra.mxu0 %v3706_v27  ;;  %3282 = vmatpush3.bf16.msra.mxu1 %v3708_v42  ;;  %v3790_v17 = vpop.eup %3789  ;;  %v619_v58 = vpack.c.bf16 %v608_v48, %v608_v48  ;;  %v622_v27 = vpack.i.b16 %v617_v31, %v617_v31  ;;  %v629_v42 = vpack.i.b16 %v618_v14, %v618_v14 }
 0x193   : > { %3207 = vmatprep.subr.bf16.mxu0 %v3709_v50  ;;  %3283 = vmatprep.subr.bf16.mxu1 %v3711_v55  ;;  %v3792_v35 = vpop.eup %3791  ;;  %v643_v50 = vpack.i.b16 %v620_v21, %v620_v21 }
 0x194   : > { %2032 = vmatmul.mubr.bf16.gmra.mrb[48].mxu0 %v3778_v10  ;;  %2294 = vmatmul.mubr.bf16.gmra.mrb[48].mxu1 %v3778_v10  ;;  %v3794_v47 = vpop.eup %3793  ;;  %v636_v55 = vpack.i.b16 %v619_v58, %v619_v58  ;;  %v4517_v19 = vrot.slane %v622_v27, %v4167_v3  ;;  %v4520_v2 = vrot.slane %v629_v42, %v4167_v3 }
 0x195   : > { %2041 = vmatprep.mubr.bf16.mxu0 %v3776_v60  ;;  %2303 = vmatprep.mubr.bf16.mxu1 %v3776_v60  ;;  %v3796_v36 = vpop.eup %3795  ;;  %v4523_v56 = vrot.slane %v643_v50, %v4167_v3 }
 0x196   : > { %3208 = vmatpush3.bf16.msra.mxu0 %v3710_v49  ;;  %3284 = vmatpush3.bf16.msra.mxu1 %v3712_v23  ;;  %v3798_v4 = vpop.eup %3797 }
 0x197   : > { %3209 = vmatprep.subr.bf16.mxu0 %v3713_v51  ;;  %3285 = vmatprep.subr.bf16.mxu1 %v3715_v41  ;;  %v3800_v5 = vpop.eup %3799 }
 0x198   : > { %v3802_v16 = vpop.eup %3801 }
 0x199   : > { %v3804_v45 = vpop.eup %3803 }
 0x19a   : > { %3210 = vmatpush3.bf16.msra.mxu0 %v3714_v13  ;;  %3286 = vmatpush3.bf16.msra.mxu1 %v3716_v26  ;;  %v4526_v13 = vrot.slane %v636_v55, %v4167_v3 }
 0x19b   : > { %3211 = vmatprep.subr.bf16.mxu0 %v3717_v37  ;;  %3287 = vmatprep.subr.bf16.mxu1 %v3719_v53 }
 0x19c   : > { %2042 = vmatmul.mubr.bf16.gmra.mrb[52].mxu0 %v3782_v33  ;;  %2304 = vmatmul.mubr.bf16.gmra.mrb[52].mxu1 %v3782_v33 }
 0x19d   : > { %2051 = vmatprep.mubr.bf16.mxu0 %v3780_v25  ;;  %2313 = vmatprep.mubr.bf16.mxu1 %v3780_v25 }
 0x19e   : > { %3212 = vmatpush3.bf16.msra.mxu0 %v3718_v39  ;;  %3288 = vmatpush3.bf16.msra.mxu1 %v3720_v0 }
 0x19f   : > { %3213 = vmatprep.subr.bf16.mxu0 %v3721_v1  ;;  %3289 = vmatprep.subr.bf16.mxu1 %v3723_v57 }
 0x1a2   : > { %3214 = vmatpush3.bf16.msra.mxu0 %v3722_v61  ;;  %3290 = vmatpush3.bf16.msra.mxu1 %v3724_v40 }
 0x1a4   : > { %2052 = vmatmul.mubr.bf16.gmra.mrb[56].mxu0 %v3786_v22  ;;  %2314 = vmatmul.mubr.bf16.gmra.mrb[56].mxu1 %v3786_v22 }
 0x1a5   : > { %2061 = vmatprep.mubr.bf16.mxu0 %v3784_v9  ;;  %2323 = vmatprep.mubr.bf16.mxu1 %v3784_v9 }
 0x1ac   : > { %2062 = vmatmul.mubr.bf16.gmra.mrb[60].mxu0 %v3790_v17  ;;  %2324 = vmatmul.mubr.bf16.gmra.mrb[60].mxu1 %v3790_v17 }
 0x1ad   : > { %2071 = vmatprep.mubr.bf16.mxu0 %v3788_v8  ;;  %2333 = vmatprep.mubr.bf16.mxu1 %v3788_v8 }
 0x1b4   : > { %2072 = vmatmul.mubr.bf16.gmra.mrb[64].mxu0 %v3794_v47  ;;  %2334 = vmatmul.mubr.bf16.gmra.mrb[64].mxu1 %v3794_v47 }
 0x1b5   : > { %2081 = vmatprep.mubr.bf16.mxu0 %v3792_v35  ;;  %2343 = vmatprep.mubr.bf16.mxu1 %v3792_v35 }
 0x1bc   : > { %2082 = vmatmul.mubr.bf16.gmra.mrb[68].mxu0 %v3798_v4  ;;  %2344 = vmatmul.mubr.bf16.gmra.mrb[68].mxu1 %v3798_v4 }
 0x1bd   : > { %2091 = vmatprep.mubr.bf16.mxu0 %v3796_v36  ;;  %2353 = vmatprep.mubr.bf16.mxu1 %v3796_v36 }
 0x1c4   : > { %2092 = vmatmul.mubr.bf16.gmra.mrb[72].mxu0 %v3802_v16  ;;  %2354 = vmatmul.mubr.bf16.gmra.mrb[72].mxu1 %v3802_v16 }
 0x1c5   : > { %2101 = vmatprep.mubr.bf16.mxu0 %v3800_v5  ;;  %2363 = vmatprep.mubr.bf16.mxu1 %v3800_v5 }
 0x1cc   : > { %2102 = vmatmul.mubr.bf16.gmra.mrb[76].mxu0 %v3804_v45  ;;  %2364 = vmatmul.mubr.bf16.gmra.mrb[76].mxu1 %v3804_v45 }
 0x257   : > { %v2013_v60 = vpop.f32.mrb[40].mxu0  ;;  %v2275_v49 = vpop.f32.mrb[40].mxu1 }
 0x258   : > { %v2015_v23 = vpop.f32.mrb[41].mxu0  ;;  %v2277_v10 = vpop.f32.mrb[41].mxu1 }
 0x259   : > { %v2017_v51 = vpop.f32.mrb[42].mxu0  ;;  %v2279_v41 = vpop.f32.mrb[42].mxu1 }
 0x25a   : > { %v2372_v62 = vpack.c.bf16 %v2017_v51, %v2013_v60  ;;  %v2374_v26 = vpack.c.bf16 %v2279_v41, %v2275_v49  ;;  %v2019_v25 = vpop.f32.mrb[43].mxu0  ;;  %v2281_v33 = vpop.f32.mrb[43].mxu1 }
 0x25b   : > { %v2373_v44 = vpack.c.bf16 %v2019_v25, %v2015_v23  ;;  %v2375_v30 = vpack.c.bf16 %v2281_v33, %v2277_v10 }
 0x25c   : > { %v2412_v34 = vadd.bf16 %v2372_v62, %v4517_v19  ;;  %v2414_v22 = vadd.bf16 %v2374_v26, %v4526_v13 }
 0x25d   : > { %v2413_v38 = vadd.bf16 %v2373_v44, %v4520_v2  ;;  %v2415_v9 = vadd.bf16 %v2375_v30, %v4523_v56 }
 0x25e   : > { %3805 = vtanh.bf16 %v2412_v34 }
 0x25f   : > { %v2023_v29 = vpop.f32.mrb[44].mxu0  ;;  %v2285_v15 = vpop.f32.mrb[44].mxu1  ;;  %3807 = vtanh.bf16 %v2413_v38 }
 0x260   : > { %v2025_v43 = vpop.f32.mrb[45].mxu0  ;;  %v2287_v3 = vpop.f32.mrb[45].mxu1  ;;  %3809 = vtanh.bf16 %v2415_v9 }
 0x261   : > { %v2027_v8 = vpop.f32.mrb[46].mxu0  ;;  %v2289_v17 = vpop.f32.mrb[46].mxu1  ;;  %3811 = vtanh.bf16 %v2414_v22 }
 0x262   : > { %v2376_v54 = vpack.c.bf16 %v2027_v8, %v2023_v29  ;;  %v2378_v12 = vpack.c.bf16 %v2289_v17, %v2285_v15  ;;  %v2029_v6 = vpop.f32.mrb[47].mxu0  ;;  %v2291_v35 = vpop.f32.mrb[47].mxu1 }
 0x263   : > { %v2377_v47 = vpack.c.bf16 %v2029_v6, %v2025_v43  ;;  %v2379_v7 = vpack.c.bf16 %v2291_v35, %v2287_v3 }
 0x264   : > { %v2416_v32 = vadd.bf16 %v2376_v54, %v4517_v19  ;;  %v2418_v59 = vadd.bf16 %v2378_v12, %v4526_v13 }
 0x265   : > { %v2417_v46 = vadd.bf16 %v2377_v47, %v4520_v2  ;;  %v2419_v36 = vadd.bf16 %v2379_v7, %v4523_v56 }
 0x266   : > { %3813 = vtanh.bf16 %v2416_v32 }
 0x267   : > { %v2033_v4 = vpop.f32.mrb[48].mxu0  ;;  %v2295_v5 = vpop.f32.mrb[48].mxu1  ;;  %3815 = vtanh.bf16 %v2417_v46 }
 0x268   : > { %v2035_v16 = vpop.f32.mrb[49].mxu0  ;;  %v2297_v45 = vpop.f32.mrb[49].mxu1  ;;  %3817 = vtanh.bf16 %v2419_v36 }
 0x269   : > { %v2037_v37 = vpop.f32.mrb[50].mxu0  ;;  %v2299_v39 = vpop.f32.mrb[50].mxu1  ;;  %3819 = vtanh.bf16 %v2418_v59 }
 0x26a   : > { %v3806_v53 = vpop.eup %3805  ;;  %v2380_v0 = vpack.c.bf16 %v2037_v37, %v2033_v4  ;;  %v2382_v1 = vpack.c.bf16 %v2299_v39, %v2295_v5  ;;  %v2039_v57 = vpop.f32.mrb[51].mxu0 }
 0x26b   : > { %v2301_v61 = vpop.f32.mrb[51].mxu1  ;;  %v3808_v40 = vpop.eup %3807  ;;  %v2381_v52 = vpack.c.bf16 %v2039_v57, %v2035_v16 }
 0x26c   : > { %v2383_v63 = vpack.c.bf16 %v2301_v61, %v2297_v45  ;;  %v3810_v20 = vpop.eup %3809  ;;  %v2420_v24 = vadd.bf16 %v2380_v0, %v4517_v19  ;;  %2716 = vmatprep.mubr.bf16.mxu0 %v3808_v40  ;;  %v2422_v48 = vadd.bf16 %v2382_v1, %v4526_v13 }
 0x26d   : > { %v3812_v28 = vpop.eup %3811  ;;  %v2421_v11 = vadd.bf16 %v2381_v52, %v4520_v2  ;;  %2828 = vmatprep.mubr.bf16.mxu1 %v3810_v20  ;;  %2717 = vmatmul.mubr.bf16.vlgmr.msra.gmra.mrb[80].mxu0 %v3806_v53 }
 0x26e   : > { %v2423_v18 = vadd.bf16 %v2383_v63, %v4523_v56  ;;  %2829 = vmatmul.mubr.bf16.vlgmr.msra.gmra.mrb[80].mxu1 %v3812_v28  ;;  %3821 = vtanh.bf16 %v2420_v24 }
 0x26f   : > { %v2043_v31 = vpop.f32.mrb[52].mxu0  ;;  %v2305_v14 = vpop.f32.mrb[52].mxu1  ;;  %3823 = vtanh.bf16 %v2421_v11 }
 0x270   : > { %v2045_v21 = vpop.f32.mrb[53].mxu0  ;;  %v2307_v58 = vpop.f32.mrb[53].mxu1  ;;  %3825 = vtanh.bf16 %v2423_v18 }
 0x271   : > { %v2047_v27 = vpop.f32.mrb[54].mxu0  ;;  %v2309_v42 = vpop.f32.mrb[54].mxu1  ;;  %3827 = vtanh.bf16 %v2422_v48 }
 0x272   : > { %v3814_v50 = vpop.eup %3813  ;;  %v2384_v55 = vpack.c.bf16 %v2047_v27, %v2043_v31  ;;  %v2386_v60 = vpack.c.bf16 %v2309_v42, %v2305_v14  ;;  %v2049_v49 = vpop.f32.mrb[55].mxu0 }
 0x273   : > { %v2311_v23 = vpop.f32.mrb[55].mxu1  ;;  %v3816_v10 = vpop.eup %3815  ;;  %v2385_v51 = vpack.c.bf16 %v2049_v49, %v2045_v21 }
 0x274   : > { %v2387_v41 = vpack.c.bf16 %v2311_v23, %v2307_v58  ;;  %v3818_v62 = vpop.eup %3817  ;;  %v2424_v26 = vadd.bf16 %v2384_v55, %v4517_v19  ;;  %2724 = vmatprep.mubr.bf16.mxu0 %v3816_v10  ;;  %v2426_v30 = vadd.bf16 %v2386_v60, %v4526_v13 }
 0x275   : > { %v3820_v25 = vpop.eup %3819  ;;  %v2425_v33 = vadd.bf16 %v2385_v51, %v4520_v2  ;;  %2836 = vmatprep.mubr.bf16.mxu1 %v3818_v62  ;;  %2725 = vmatmul.mubr.bf16.gmra.mrb[84].mxu0 %v3814_v50 }
 0x276   : > { %v2427_v44 = vadd.bf16 %v2387_v41, %v4523_v56  ;;  %2837 = vmatmul.mubr.bf16.gmra.mrb[84].mxu1 %v3820_v25  ;;  %3829 = vtanh.bf16 %v2424_v26 }
 0x277   : > { %v2053_v34 = vpop.f32.mrb[56].mxu0  ;;  %v2315_v38 = vpop.f32.mrb[56].mxu1  ;;  %3831 = vtanh.bf16 %v2425_v33 }
 0x278   : > { %v2055_v9 = vpop.f32.mrb[57].mxu0  ;;  %v2317_v22 = vpop.f32.mrb[57].mxu1  ;;  %3833 = vtanh.bf16 %v2427_v44 }
 0x279   : > { %v2057_v29 = vpop.f32.mrb[58].mxu0  ;;  %v2319_v15 = vpop.f32.mrb[58].mxu1  ;;  %3835 = vtanh.bf16 %v2426_v30 }
 0x27a   : > { %v3822_v43 = vpop.eup %3821  ;;  %v2388_v3 = vpack.c.bf16 %v2057_v29, %v2053_v34  ;;  %v2390_v8 = vpack.c.bf16 %v2319_v15, %v2315_v38  ;;  %v2059_v17 = vpop.f32.mrb[59].mxu0 }
 0x27b   : > { %v2321_v54 = vpop.f32.mrb[59].mxu1  ;;  %v3824_v12 = vpop.eup %3823  ;;  %v2389_v6 = vpack.c.bf16 %v2059_v17, %v2055_v9 }
 0x27c   : > { %v2391_v35 = vpack.c.bf16 %v2321_v54, %v2317_v22  ;;  %v3826_v47 = vpop.eup %3825  ;;  %v2428_v7 = vadd.bf16 %v2388_v3, %v4517_v19  ;;  %2732 = vmatprep.mubr.bf16.mxu0 %v3824_v12  ;;  %v2430_v59 = vadd.bf16 %v2390_v8, %v4526_v13 }
 0x27d   : > { %v3828_v32 = vpop.eup %3827  ;;  %v2429_v46 = vadd.bf16 %v2389_v6, %v4520_v2  ;;  %2844 = vmatprep.mubr.bf16.mxu1 %v3826_v47  ;;  %2733 = vmatmul.mubr.bf16.gmra.mrb[88].mxu0 %v3822_v43 }
 0x27e   : > { %v2431_v36 = vadd.bf16 %v2391_v35, %v4523_v56  ;;  %2845 = vmatmul.mubr.bf16.gmra.mrb[88].mxu1 %v3828_v32  ;;  %3837 = vtanh.bf16 %v2428_v7 }
 0x27f   : > { %v2063_v4 = vpop.f32.mrb[60].mxu0  ;;  %v2325_v5 = vpop.f32.mrb[60].mxu1  ;;  %3839 = vtanh.bf16 %v2429_v46 }
 0x280   : > { %v2065_v16 = vpop.f32.mrb[61].mxu0  ;;  %v2327_v45 = vpop.f32.mrb[61].mxu1  ;;  %3841 = vtanh.bf16 %v2431_v36 }
 0x281   : > { %v2067_v37 = vpop.f32.mrb[62].mxu0  ;;  %v2329_v39 = vpop.f32.mrb[62].mxu1  ;;  %3843 = vtanh.bf16 %v2430_v59 }
 0x282   : > { %v3830_v53 = vpop.eup %3829  ;;  %v2392_v0 = vpack.c.bf16 %v2067_v37, %v2063_v4  ;;  %v2394_v1 = vpack.c.bf16 %v2329_v39, %v2325_v5  ;;  %v2069_v57 = vpop.f32.mrb[63].mxu0 }
 0x283   : > { %v2331_v61 = vpop.f32.mrb[63].mxu1  ;;  %v3832_v40 = vpop.eup %3831  ;;  %v2393_v52 = vpack.c.bf16 %v2069_v57, %v2065_v16 }
 0x284   : > { %v2395_v63 = vpack.c.bf16 %v2331_v61, %v2327_v45  ;;  %v3834_v20 = vpop.eup %3833  ;;  %v2432_v24 = vadd.bf16 %v2392_v0, %v4517_v19  ;;  %2740 = vmatprep.mubr.bf16.mxu0 %v3832_v40  ;;  %v2434_v48 = vadd.bf16 %v2394_v1, %v4526_v13 }
 0x285   : > { %v3836_v28 = vpop.eup %3835  ;;  %v2433_v11 = vadd.bf16 %v2393_v52, %v4520_v2  ;;  %2852 = vmatprep.mubr.bf16.mxu1 %v3834_v20  ;;  %2741 = vmatmul.mubr.bf16.gmra.mrb[92].mxu0 %v3830_v53 }
 0x286   : > { %v2435_v18 = vadd.bf16 %v2395_v63, %v4523_v56  ;;  %2853 = vmatmul.mubr.bf16.gmra.mrb[92].mxu1 %v3836_v28  ;;  %3845 = vtanh.bf16 %v2432_v24 }
 0x287   : > { %v2073_v31 = vpop.f32.mrb[64].mxu0  ;;  %v2335_v14 = vpop.f32.mrb[64].mxu1  ;;  %3847 = vtanh.bf16 %v2433_v11 }
 0x288   : > { %v2075_v21 = vpop.f32.mrb[65].mxu0  ;;  %v2337_v58 = vpop.f32.mrb[65].mxu1  ;;  %3849 = vtanh.bf16 %v2435_v18 }
 0x289   : > { %v2077_v27 = vpop.f32.mrb[66].mxu0  ;;  %v2339_v42 = vpop.f32.mrb[66].mxu1  ;;  %3851 = vtanh.bf16 %v2434_v48 }
 0x28a   : > { %v3838_v50 = vpop.eup %3837  ;;  %v2396_v55 = vpack.c.bf16 %v2077_v27, %v2073_v31  ;;  %v2398_v60 = vpack.c.bf16 %v2339_v42, %v2335_v14  ;;  %v2079_v49 = vpop.f32.mrb[67].mxu0 }
 0x28b   : > { %v2341_v23 = vpop.f32.mrb[67].mxu1  ;;  %v3840_v10 = vpop.eup %3839  ;;  %v2397_v51 = vpack.c.bf16 %v2079_v49, %v2075_v21 }
 0x28c   : > { %v2399_v41 = vpack.c.bf16 %v2341_v23, %v2337_v58  ;;  %v3842_v62 = vpop.eup %3841  ;;  %v2436_v26 = vadd.bf16 %v2396_v55, %v4517_v19  ;;  %2748 = vmatprep.mubr.bf16.mxu0 %v3840_v10  ;;  %v2438_v30 = vadd.bf16 %v2398_v60, %v4526_v13 }
 0x28d   : > { %v3844_v25 = vpop.eup %3843  ;;  %v2437_v33 = vadd.bf16 %v2397_v51, %v4520_v2  ;;  %2860 = vmatprep.mubr.bf16.mxu1 %v3842_v62  ;;  %2749 = vmatmul.mubr.bf16.gmra.mrb[96].mxu0 %v3838_v50 }
 0x28e   : > { %v2439_v44 = vadd.bf16 %v2399_v41, %v4523_v56  ;;  %2861 = vmatmul.mubr.bf16.gmra.mrb[96].mxu1 %v3844_v25  ;;  %3853 = vtanh.bf16 %v2436_v26 }
 0x28f   : > { %v2083_v34 = vpop.f32.mrb[68].mxu0  ;;  %v2345_v38 = vpop.f32.mrb[68].mxu1  ;;  %3855 = vtanh.bf16 %v2437_v33 }
 0x290   : > { %v2085_v9 = vpop.f32.mrb[69].mxu0  ;;  %v2347_v22 = vpop.f32.mrb[69].mxu1  ;;  %3857 = vtanh.bf16 %v2439_v44 }
 0x291   : > { %v2087_v29 = vpop.f32.mrb[70].mxu0  ;;  %v2349_v15 = vpop.f32.mrb[70].mxu1  ;;  %3859 = vtanh.bf16 %v2438_v30 }
 0x292   : > { %v3846_v43 = vpop.eup %3845  ;;  %v2400_v3 = vpack.c.bf16 %v2087_v29, %v2083_v34  ;;  %v2402_v8 = vpack.c.bf16 %v2349_v15, %v2345_v38  ;;  %v2089_v17 = vpop.f32.mrb[71].mxu0 }
 0x293   : > { %v2351_v54 = vpop.f32.mrb[71].mxu1  ;;  %v3848_v12 = vpop.eup %3847  ;;  %v2401_v6 = vpack.c.bf16 %v2089_v17, %v2085_v9 }
 0x294   : > { %v2403_v35 = vpack.c.bf16 %v2351_v54, %v2347_v22  ;;  %v3850_v47 = vpop.eup %3849  ;;  %v2440_v7 = vadd.bf16 %v2400_v3, %v4517_v19  ;;  %2756 = vmatprep.mubr.bf16.mxu0 %v3848_v12  ;;  %v2442_v59 = vadd.bf16 %v2402_v8, %v4526_v13 }
 0x295   : > { %v3852_v32 = vpop.eup %3851  ;;  %v2441_v46 = vadd.bf16 %v2401_v6, %v4520_v2  ;;  %2868 = vmatprep.mubr.bf16.mxu1 %v3850_v47  ;;  %2757 = vmatmul.mubr.bf16.gmra.mrb[100].mxu0 %v3846_v43  ;;  %v4571_v43 = vld [vmem:[%s4627_s6] ss:$0 sm:$0xff] }
 0x296   : > { %v2443_v36 = vadd.bf16 %v2403_v35, %v4523_v56  ;;  %2869 = vmatmul.mubr.bf16.gmra.mrb[100].mxu1 %v3852_v32  ;;  %3861 = vtanh.bf16 %v2440_v7 }
 0x297   : > { %v2093_v4 = vpop.f32.mrb[72].mxu0  ;;  %v2355_v5 = vpop.f32.mrb[72].mxu1  ;;  %3863 = vtanh.bf16 %v2441_v46 }
 0x298   : > { %v2095_v16 = vpop.f32.mrb[73].mxu0  ;;  %v2357_v45 = vpop.f32.mrb[73].mxu1  ;;  %3865 = vtanh.bf16 %v2443_v36 }
 0x299   : > { %v2097_v37 = vpop.f32.mrb[74].mxu0  ;;  %v2359_v39 = vpop.f32.mrb[74].mxu1  ;;  %3867 = vtanh.bf16 %v2442_v59 }
 0x29a   : > { %v3854_v53 = vpop.eup %3853  ;;  %v2404_v0 = vpack.c.bf16 %v2097_v37, %v2093_v4  ;;  %v2406_v1 = vpack.c.bf16 %v2359_v39, %v2355_v5  ;;  %v2099_v57 = vpop.f32.mrb[75].mxu0 }
 0x29b   : > { %v2361_v61 = vpop.f32.mrb[75].mxu1  ;;  %v3856_v40 = vpop.eup %3855  ;;  %v2405_v52 = vpack.c.bf16 %v2099_v57, %v2095_v16 }
 0x29c   : > { %v2407_v63 = vpack.c.bf16 %v2361_v61, %v2357_v45  ;;  %v3858_v20 = vpop.eup %3857  ;;  %v2444_v24 = vadd.bf16 %v2404_v0, %v4517_v19  ;;  %2764 = vmatprep.mubr.bf16.mxu0 %v3856_v40  ;;  %v2446_v48 = vadd.bf16 %v2406_v1, %v4526_v13 }
 0x29d   : > { %v3860_v28 = vpop.eup %3859  ;;  %v2445_v11 = vadd.bf16 %v2405_v52, %v4520_v2  ;;  %2876 = vmatprep.mubr.bf16.mxu1 %v3858_v20  ;;  %2765 = vmatmul.mubr.bf16.gmra.mrb[104].mxu0 %v3854_v53 }
 0x29e   : > { %v2447_v18 = vadd.bf16 %v2407_v63, %v4523_v56  ;;  %2877 = vmatmul.mubr.bf16.gmra.mrb[104].mxu1 %v3860_v28  ;;  %3869 = vtanh.bf16 %v2444_v24 }
 0x29f   : > { %v2103_v31 = vpop.f32.mrb[76].mxu0  ;;  %v2365_v14 = vpop.f32.mrb[76].mxu1  ;;  %3871 = vtanh.bf16 %v2445_v11 }
 0x2a0   : > { %v2105_v21 = vpop.f32.mrb[77].mxu0  ;;  %v2367_v58 = vpop.f32.mrb[77].mxu1  ;;  %3873 = vtanh.bf16 %v2447_v18  ;;  %v2408_v27 = vpack.c.bf16 %v2103_v31, %v2103_v31  ;;  %v2410_v23 = vpack.c.bf16 %v2365_v14, %v2365_v14 }
 0x2a1   : > { %v2409_v42 = vpack.c.bf16 %v2105_v21, %v2105_v21  ;;  %v2411_v50 = vpack.c.bf16 %v2367_v58, %v2367_v58  ;;  %v2107_v55 = vpop.f32.mrb[78].mxu0  ;;  %v2369_v60 = vpop.f32.mrb[78].mxu1  ;;  %3875 = vtanh.bf16 %v2446_v48 }
 0x2a2   : > { %v3862_v49 = vpop.eup %3861  ;;  %v2108_v10 = vpop.f32.mrb[79].mxu0  ;;  %v2448_v44 = vadd.bf16 %v2408_v27, %v4517_v19  ;;  %v2450_v30 = vadd.bf16 %v2410_v23, %v4526_v13 }
 0x2a3   : > { %v2370_v51 = vpop.f32.mrb[79].mxu1  ;;  %v3864_v41 = vpop.eup %3863  ;;  %v2449_v62 = vadd.bf16 %v2409_v42, %v4520_v2  ;;  %v2451_v26 = vadd.bf16 %v2411_v50, %v4523_v56 }
 0x2a4   : > { %v3866_v25 = vpop.eup %3865  ;;  %2772 = vmatprep.mubr.bf16.mxu0 %v3864_v41 }
 0x2a5   : > { %v3868_v33 = vpop.eup %3867  ;;  %2884 = vmatprep.mubr.bf16.mxu1 %v3866_v25  ;;  %2773 = vmatmul.mubr.bf16.gmra.mrb[108].mxu0 %v3862_v49  ;;  %3877 = vtanh.bf16 %v2449_v62 }
 0x2a6   : > { %2885 = vmatmul.mubr.bf16.gmra.mrb[108].mxu1 %v3868_v33  ;;  %3879 = vtanh.bf16 %v2451_v26 }
 0x2a7   : > { %3881 = vtanh.bf16 %v2448_v44 }
 0x2a8   : > { %3883 = vtanh.bf16 %v2450_v30 }
 0x2a9   : > { %v3870_v34 = vpop.eup %3869 }
 0x2aa   : > { %v3872_v38 = vpop.eup %3871 }
 0x2ab   : > { %v3874_v9 = vpop.eup %3873  ;;  %2780 = vmatprep.mubr.bf16.mxu0 %v3872_v38 }
 0x2ac   : > { %v3876_v2 = vpop.eup %3875  ;;  %2892 = vmatprep.mubr.bf16.mxu1 %v3874_v9 }
 0x2ad   : > { %2781 = vmatmul.mubr.bf16.gmra.mrb[112].mxu0 %v3870_v34 }
 0x2ae   : > { %2893 = vmatmul.mubr.bf16.gmra.mrb[112].mxu1 %v3876_v2 }
 0x2b0   : > { %v3878_v56 = vpop.eup %3877 }
 0x2b1   : > { %v3880_v22 = vpop.eup %3879  ;;  %2788 = vmatprep.mubr.bf16.mxu0 %v3878_v56 }
 0x2b2   : > { %2900 = vmatprep.mubr.bf16.mxu1 %v3880_v22  ;;  %v3882_v19 = vpop.eup %3881 }
 0x2b3   : > { %v3884_v29 = vpop.eup %3883 }
 0x2b5   : > { %2789 = vmatmul.mubr.bf16.gmra.mrb[116].mxu0 %v3882_v19 }
 0x2b6   : > { %2901 = vmatmul.mubr.bf16.gmra.mrb[116].mxu1 %v3884_v29 }
 0x340   : > { %v3215_v13 = vpop.f32.mrb[80].mxu0 }
 0x341   : > { %v3291_v15 = vpop.f32.mrb[80].mxu1  ;;  %v3216_v3 = vpop.f32.mrb[81].mxu0 }
 0x342   : > { %v3217_v8 = vadd.f32 %v3216_v3, %v3215_v13  ;;  %v3292_v17 = vpop.f32.mrb[81].mxu1  ;;  %v3218_v54 = vpop.f32.mrb[82].mxu0 }
 0x343   : > { %v3293_v12 = vadd.f32 %v3292_v17, %v3291_v15  ;;  %v3294_v6 = vpop.f32.mrb[82].mxu1  ;;  %v3219_v35 = vpop.f32.mrb[83].mxu0 }
 0x344   : > { %v2719_v47 = vadd.f32 %v3217_v8, %v4571_v43  ;;  %v3220_v7 = vadd.f32 %v3219_v35, %v3218_v54  ;;  %v3295_v32 = vpop.f32.mrb[83].mxu1 }
 0x345   : > { %v3296_v46 = vadd.f32 %v3295_v32, %v3294_v6 }
 0x346   : > { %v2831_v36 = vadd.f32 %v3293_v12, %v2719_v47  ;;  %v2722_v59 = vadd.f32 %v3220_v7, %v4571_v43 }
 0x348   : > { %2908 = vst [vmem:[%s4579_s19] sm:$0xff] %v2831_v36  ;;  %v2834_v4 = vadd.f32 %v3296_v46, %v2722_v59  ;;  %v3221_v5 = vpop.f32.mrb[84].mxu0 }
 0x349   : > { %v3297_v16 = vpop.f32.mrb[84].mxu1  ;;  %v3222_v45 = vpop.f32.mrb[85].mxu0 }
 0x34a   : > { %2909 = vst [vmem:[%s4579_s19 + $0x8] sm:$0xff] %v2834_v4  ;;  %v3223_v37 = vadd.f32 %v3222_v45, %v3221_v5  ;;  %v3298_v39 = vpop.f32.mrb[85].mxu1  ;;  %v3224_v53 = vpop.f32.mrb[86].mxu0 }
 0x34b   : > { %v3299_v0 = vadd.f32 %v3298_v39, %v3297_v16  ;;  %v3300_v1 = vpop.f32.mrb[86].mxu1  ;;  %v3225_v57 = vpop.f32.mrb[87].mxu0 }
 0x34c   : > { %v2727_v61 = vadd.f32 %v3223_v37, %v4571_v43  ;;  %v3226_v40 = vadd.f32 %v3225_v57, %v3224_v53  ;;  %v3301_v52 = vpop.f32.mrb[87].mxu1 }
 0x34d   : > { %v3302_v63 = vadd.f32 %v3301_v52, %v3300_v1 }
 0x34e   : > { %v2839_v20 = vadd.f32 %v3299_v0, %v2727_v61  ;;  %v2730_v24 = vadd.f32 %v3226_v40, %v4571_v43 }
 0x350   : > { %2910 = vst [vmem:[%s4579_s19 + $0x10] sm:$0xff] %v2839_v20  ;;  %v2842_v28 = vadd.f32 %v3302_v63, %v2730_v24  ;;  %v3227_v11 = vpop.f32.mrb[88].mxu0 }
 0x351   : > { %v3303_v18 = vpop.f32.mrb[88].mxu1  ;;  %v3228_v48 = vpop.f32.mrb[89].mxu0 }
 0x352   : > { %2911 = vst [vmem:[%s4579_s19 + $0x18] sm:$0xff] %v2842_v28  ;;  %v3229_v31 = vadd.f32 %v3228_v48, %v3227_v11  ;;  %v3304_v14 = vpop.f32.mrb[89].mxu1  ;;  %v3230_v21 = vpop.f32.mrb[90].mxu0 }
 0x353   : > { %v3305_v58 = vadd.f32 %v3304_v14, %v3303_v18  ;;  %v3306_v27 = vpop.f32.mrb[90].mxu1  ;;  %v3231_v42 = vpop.f32.mrb[91].mxu0 }
 0x354   : > { %v2735_v50 = vadd.f32 %v3229_v31, %v4571_v43  ;;  %v3232_v55 = vadd.f32 %v3231_v42, %v3230_v21  ;;  %v3307_v60 = vpop.f32.mrb[91].mxu1 }
 0x355   : > { %v3308_v49 = vadd.f32 %v3307_v60, %v3306_v27 }
 0x356   : > { %v2847_v23 = vadd.f32 %v3305_v58, %v2735_v50  ;;  %v2738_v10 = vadd.f32 %v3232_v55, %v4571_v43 }
 0x358   : > { %2912 = vst [vmem:[%s4579_s19 + $0x20] sm:$0xff] %v2847_v23  ;;  %v2850_v51 = vadd.f32 %v3308_v49, %v2738_v10  ;;  %v3233_v41 = vpop.f32.mrb[92].mxu0 }
 0x359   : > { %v3309_v62 = vpop.f32.mrb[92].mxu1  ;;  %v3234_v26 = vpop.f32.mrb[93].mxu0 }
 0x35a   : > { %2913 = vst [vmem:[%s4579_s19 + $0x28] sm:$0xff] %v2850_v51  ;;  %v3235_v25 = vadd.f32 %v3234_v26, %v3233_v41  ;;  %v3310_v33 = vpop.f32.mrb[93].mxu1  ;;  %v3236_v44 = vpop.f32.mrb[94].mxu0 }
 0x35b   : > { %v3311_v30 = vadd.f32 %v3310_v33, %v3309_v62  ;;  %v3312_v34 = vpop.f32.mrb[94].mxu1  ;;  %v3237_v38 = vpop.f32.mrb[95].mxu0 }
 0x35c   : > { %v2743_v9 = vadd.f32 %v3235_v25, %v4571_v43  ;;  %v3238_v2 = vadd.f32 %v3237_v38, %v3236_v44  ;;  %v3313_v56 = vpop.f32.mrb[95].mxu1 }
 0x35d   : > { %v3314_v22 = vadd.f32 %v3313_v56, %v3312_v34 }
 0x35e   : > { %v2855_v19 = vadd.f32 %v3311_v30, %v2743_v9  ;;  %v2746_v29 = vadd.f32 %v3238_v2, %v4571_v43 }
 0x360   : > { %2914 = vst [vmem:[%s4579_s19 + $0x30] sm:$0xff] %v2855_v19  ;;  %v2858_v13 = vadd.f32 %v3314_v22, %v2746_v29  ;;  %v3239_v15 = vpop.f32.mrb[96].mxu0 }
 0x361   : > { %v3315_v3 = vpop.f32.mrb[96].mxu1  ;;  %v3240_v8 = vpop.f32.mrb[97].mxu0 }
 0x362   : > { %2915 = vst [vmem:[%s4579_s19 + $0x38] sm:$0xff] %v2858_v13  ;;  %v3241_v17 = vadd.f32 %v3240_v8, %v3239_v15  ;;  %v3316_v54 = vpop.f32.mrb[97].mxu1  ;;  %v3242_v12 = vpop.f32.mrb[98].mxu0 }
 0x363   : > { %v3317_v6 = vadd.f32 %v3316_v54, %v3315_v3  ;;  %v3318_v35 = vpop.f32.mrb[98].mxu1  ;;  %v3243_v47 = vpop.f32.mrb[99].mxu0 }
 0x364   : > { %v2751_v7 = vadd.f32 %v3241_v17, %v4571_v43  ;;  %v3244_v32 = vadd.f32 %v3243_v47, %v3242_v12  ;;  %v3319_v46 = vpop.f32.mrb[99].mxu1 }
 0x365   : > { %v3320_v36 = vadd.f32 %v3319_v46, %v3318_v35 }
 0x366   : > { %v2863_v59 = vadd.f32 %v3317_v6, %v2751_v7  ;;  %v2754_v4 = vadd.f32 %v3244_v32, %v4571_v43 }
 0x368   : > { %2916 = vst [vmem:[%s4579_s19 + $0x40] sm:$0xff] %v2863_v59  ;;  %v2866_v5 = vadd.f32 %v3320_v36, %v2754_v4  ;;  %v3245_v16 = vpop.f32.mrb[100].mxu0 }
 0x369   : > { %v3321_v45 = vpop.f32.mrb[100].mxu1  ;;  %v3246_v37 = vpop.f32.mrb[101].mxu0 }
 0x36a   : > { %2917 = vst [vmem:[%s4579_s19 + $0x48] sm:$0xff] %v2866_v5  ;;  %v3247_v39 = vadd.f32 %v3246_v37, %v3245_v16  ;;  %v3322_v53 = vpop.f32.mrb[101].mxu1  ;;  %v3248_v0 = vpop.f32.mrb[102].mxu0 }
 0x36b   : > { %v3323_v1 = vadd.f32 %v3322_v53, %v3321_v45  ;;  %v3324_v57 = vpop.f32.mrb[102].mxu1  ;;  %v3249_v61 = vpop.f32.mrb[103].mxu0 }
 0x36c   : > { %v2759_v40 = vadd.f32 %v3247_v39, %v4571_v43  ;;  %v3250_v52 = vadd.f32 %v3249_v61, %v3248_v0  ;;  %v3325_v63 = vpop.f32.mrb[103].mxu1 }
 0x36d   : > { %v3326_v20 = vadd.f32 %v3325_v63, %v3324_v57 }
 0x36e   : > { %v2871_v24 = vadd.f32 %v3323_v1, %v2759_v40  ;;  %v2762_v28 = vadd.f32 %v3250_v52, %v4571_v43 }
 0x370   : > { %2918 = vst [vmem:[%s4579_s19 + $0x50] sm:$0xff] %v2871_v24  ;;  %v2874_v11 = vadd.f32 %v3326_v20, %v2762_v28  ;;  %v3251_v18 = vpop.f32.mrb[104].mxu0 }
 0x371   : > { %v3327_v48 = vpop.f32.mrb[104].mxu1  ;;  %v3252_v31 = vpop.f32.mrb[105].mxu0 }
 0x372   : > { %2919 = vst [vmem:[%s4579_s19 + $0x58] sm:$0xff] %v2874_v11  ;;  %v3253_v14 = vadd.f32 %v3252_v31, %v3251_v18  ;;  %v3328_v21 = vpop.f32.mrb[105].mxu1  ;;  %v3254_v58 = vpop.f32.mrb[106].mxu0 }
 0x373   : > { %v3329_v27 = vadd.f32 %v3328_v21, %v3327_v48  ;;  %v3330_v42 = vpop.f32.mrb[106].mxu1  ;;  %v3255_v50 = vpop.f32.mrb[107].mxu0 }
 0x374   : > { %v2767_v55 = vadd.f32 %v3253_v14, %v4571_v43  ;;  %v3256_v60 = vadd.f32 %v3255_v50, %v3254_v58  ;;  %v3331_v49 = vpop.f32.mrb[107].mxu1 }
 0x375   : > { %v3332_v23 = vadd.f32 %v3331_v49, %v3330_v42 }
 0x376   : > { %v2879_v10 = vadd.f32 %v3329_v27, %v2767_v55  ;;  %v2770_v51 = vadd.f32 %v3256_v60, %v4571_v43 }
 0x378   : > { %2920 = vst [vmem:[%s4579_s19 + $0x60] sm:$0xff] %v2879_v10  ;;  %v2882_v41 = vadd.f32 %v3332_v23, %v2770_v51  ;;  %v3257_v62 = vpop.f32.mrb[108].mxu0 }
 0x379   : > { %v3333_v26 = vpop.f32.mrb[108].mxu1  ;;  %v3258_v25 = vpop.f32.mrb[109].mxu0 }
 0x37a   : > { %2921 = vst [vmem:[%s4579_s19 + $0x68] sm:$0xff] %v2882_v41  ;;  %v3259_v33 = vadd.f32 %v3258_v25, %v3257_v62  ;;  %v3334_v44 = vpop.f32.mrb[109].mxu1  ;;  %v3260_v30 = vpop.f32.mrb[110].mxu0 }
 0x37b   : > { %v3335_v34 = vadd.f32 %v3334_v44, %v3333_v26  ;;  %v3336_v38 = vpop.f32.mrb[110].mxu1  ;;  %v3261_v9 = vpop.f32.mrb[111].mxu0 }
 0x37c   : > { %v2775_v2 = vadd.f32 %v3259_v33, %v4571_v43  ;;  %v3262_v56 = vadd.f32 %v3261_v9, %v3260_v30  ;;  %v3337_v22 = vpop.f32.mrb[111].mxu1 }
 0x37d   : > { %v3338_v19 = vadd.f32 %v3337_v22, %v3336_v38 }
 0x37e   : > { %v2887_v29 = vadd.f32 %v3335_v34, %v2775_v2  ;;  %v2778_v13 = vadd.f32 %v3262_v56, %v4571_v43 }
 0x380   : > { %2922 = vst [vmem:[%s4579_s19 + $0x70] sm:$0xff] %v2887_v29  ;;  %v2890_v15 = vadd.f32 %v3338_v19, %v2778_v13  ;;  %v3263_v3 = vpop.f32.mrb[112].mxu0 }
 0x381   : > { %v3339_v8 = vpop.f32.mrb[112].mxu1  ;;  %v3264_v17 = vpop.f32.mrb[113].mxu0 }
 0x382   : > { %2923 = vst [vmem:[%s4579_s19 + $0x78] sm:$0xff] %v2890_v15  ;;  %v3265_v54 = vadd.f32 %v3264_v17, %v3263_v3  ;;  %v3340_v12 = vpop.f32.mrb[113].mxu1  ;;  %v3266_v6 = vpop.f32.mrb[114].mxu0 }
 0x383   : > { %v3341_v35 = vadd.f32 %v3340_v12, %v3339_v8  ;;  %v3342_v47 = vpop.f32.mrb[114].mxu1  ;;  %v3267_v7 = vpop.f32.mrb[115].mxu0 }
 0x384   : > { %v2783_v32 = vadd.f32 %v3265_v54, %v4571_v43  ;;  %v3268_v46 = vadd.f32 %v3267_v7, %v3266_v6  ;;  %v3343_v36 = vpop.f32.mrb[115].mxu1 }
 0x385   : > { %v3344_v59 = vadd.f32 %v3343_v36, %v3342_v47 }
 0x386   : > { %v2895_v4 = vadd.f32 %v3341_v35, %v2783_v32  ;;  %v2786_v5 = vadd.f32 %v3268_v46, %v4571_v43 }
 0x388   : > { %2924 = vst [vmem:[%s4579_s19 + $0x80] sm:$0xff] %v2895_v4  ;;  %v2898_v16 = vadd.f32 %v3344_v59, %v2786_v5  ;;  %v3269_v45 = vpop.f32.mrb[116].mxu0 }
 0x389   : > { %v3345_v37 = vpop.f32.mrb[116].mxu1  ;;  %v3270_v39 = vpop.f32.mrb[117].mxu0 }
 0x38a   : > { %2925 = vst [vmem:[%s4579_s19 + $0x88] sm:$0xff] %v2898_v16  ;;  %v3271_v53 = vadd.f32 %v3270_v39, %v3269_v45  ;;  %v3346_v0 = vpop.f32.mrb[117].mxu1  ;;  %v3272_v1 = vpop.f32.mrb[118].mxu0 }
 0x38b   : > { %v3347_v57 = vadd.f32 %v3346_v0, %v3345_v37  ;;  %v3348_v61 = vpop.f32.mrb[118].mxu1  ;;  %v3273_v40 = vpop.f32.mrb[119].mxu0 }
 0x38c   : > { %v2791_v52 = vadd.f32 %v3271_v53, %v4571_v43  ;;  %v3349_v63 = vpop.f32.mrb[119].mxu1 }
 0x38e   : > { %v2903_v20 = vadd.f32 %v3347_v57, %v2791_v52 }
 0x390   : > { %2926 = vst [vmem:[%s4579_s19 + $0x90] sm:$0xff] %v2903_v20 }
 0x391 PF: > { %s18_s24 = sadd.s32 1, %s3923_s24  }
 0x392   : > { %p15_p3 = scmp.ge.s32.totalorder %s18_s24, 4  }
 0x394   :  { %17 = sbr.rel (!%p15_p3) target bundleno = 1 (0x1), region = 83 }
 0x39b   :  { %2949 = vsyncpa [#allocation3], 1 }
 0x39c   :  { %2951 = vsyncpa [#allocation3 + $0x1], 1 }

</bundles_post_ra>
